<compile_context>
chip_gen: v7x
topology: tpu7x:2x2x1
jax: 0.10.0
libtpu: 0.0.40
codegen_flags: <defaults>
</compile_context>

<pallas_src>
import math

import jax
import jax.numpy as jnp
from jax.experimental import pallas as pl
from jax.experimental.pallas import tpu as pltpu


# ---------------------------------------------------------------------------
# Config (small, deterministic)
# ---------------------------------------------------------------------------
B = 2                # batch
PANO_LEN = 8         # pano sequence length
H = 32               # hidden size
NH = 4               # attention heads
DH = H // NH         # head dim
INTER = 64           # intermediate size
FIMG = 64            # image_feat_size
FANG = 8             # angle_feat_size
MAX_STEPS = 16       # max_action_steps
NUM_PANO_LAYERS = 2  # num_h_pano_layers
LN_EPS = 1e-12
INV_SQRT2 = 1.0 / math.sqrt(2.0)

# --- slab_h layout (everything whose last dim is H=32), row offsets --------
OFF_IMG_W = 0                    # (FIMG, H)
OFF_ANG_W = 64                   # (FANG, H)
OFF_PIMG_W = 72                  # (FIMG, H)
OFF_PANG_W = 136                 # (FANG, H)
OFF_IMG_B = 144
OFF_ANG_B = 145
OFF_PIMG_B = 146
OFF_PANG_B = 147                 # pad to 152
OFF_LN_IMG_G, OFF_LN_IMG_B = 152, 153
OFF_LN_ANG_G, OFF_LN_ANG_B = 154, 155
OFF_LN_PIMG_G, OFF_LN_PIMG_B = 156, 157
OFF_LN_PANG_G, OFF_LN_PANG_B = 158, 159
OFF_LN_FIN_G, OFF_LN_FIN_B = 160, 161   # pad to 168
OFF_LAYER = 168
LAYER_STRIDE = 104               # per-layer block (rows), 8-aligned
# within a layer block:
L_WO = 0                         # (H, H)
L_WF2 = 32                       # (INTER, H)
L_BO = 96
L_BF2 = 97
L_LN1G, L_LN1B = 98, 99
L_LN2G, L_LN2B = 100, 101        # pad to 104
SLAB_H_ROWS = OFF_LAYER + NUM_PANO_LAYERS * LAYER_STRIDE

QKV_STRIDE = 40                  # per layer: 32 rows Wqkv, 1 row bqkv, 7 pad (8-aligned)
F1_STRIDE = 40                   # per layer: 32 rows W1,   1 row b1,   7 pad


# ---------------------------------------------------------------------------
# Fused Pallas kernel (gridless, everything resident in VMEM)
# ---------------------------------------------------------------------------
def hist_emb_kernel(img_ref, ang_ref, pimg_ref, pang_ref, posty_ref,
                    bias_ref, mean_ref, sh_ref, sqkv_ref, sf1_ref, out_ref):
    f32 = jnp.float32

    def rows(off, n):
        return sh_ref[off:off + n, :]

    def row(off):
        return sh_ref[off:off + 1, :]

    def ln(x, g, b):
        mu = jnp.mean(x, axis=-1, keepdims=True)
        var = jnp.mean(jnp.square(x - mu), axis=-1, keepdims=True)
        return (x - mu) * jax.lax.rsqrt(var + LN_EPS) * g + b

    # ---- step-level embeddings: (B, H) ------------------------------------
    h_img = ln(jnp.dot(img_ref[...], rows(OFF_IMG_W, FIMG), preferred_element_type=f32)
               + row(OFF_IMG_B), row(OFF_LN_IMG_G), row(OFF_LN_IMG_B))
    h_ang = ln(jnp.dot(ang_ref[...], rows(OFF_ANG_W, FANG), preferred_element_type=f32)
               + row(OFF_ANG_B), row(OFF_LN_ANG_G), row(OFF_LN_ANG_B))
    base = h_img + h_ang + posty_ref[...]          # pos + type already summed in wrapper

    # ---- pano embeddings, batch flattened to (B*P, H) ----------------------
    x = (ln(jnp.dot(pimg_ref[...], rows(OFF_PIMG_W, FIMG), preferred_element_type=f32)
            + row(OFF_PIMG_B), row(OFF_LN_PIMG_G), row(OFF_LN_PIMG_B))
         + ln(jnp.dot(pang_ref[...], rows(OFF_PANG_W, FANG), preferred_element_type=f32)
              + row(OFF_PANG_B), row(OFF_LN_PANG_G), row(OFF_LN_PANG_B)))

    attn_bias = bias_ref[...]                      # (BP, BP) block-diagonal 0 / -1e9
    scale = 1.0 / math.sqrt(DH)

    for l in range(NUM_PANO_LAYERS):               # static unroll (tiny)
        # ----- fused QKV projection: one (BP,H)@(H,3H) matmul ---------------
        qb = l * QKV_STRIDE
        qkv = (jnp.dot(x, sqkv_ref[qb:qb + H, :], preferred_element_type=f32)
               + sqkv_ref[qb + H:qb + H + 1, :])   # (BP, 3H)

        # ----- per-head attention on static lane slices of qkv --------------
        ctx_heads = []
        for h in range(NH):
            qh = qkv[:, h * DH:(h + 1) * DH]
            kh = qkv[:, H + h * DH:H + (h + 1) * DH]
            vh = qkv[:, 2 * H + h * DH:2 * H + (h + 1) * DH]
            s = jax.lax.dot_general(qh, kh, (((1,), (1,)), ((), ())),
                                    preferred_element_type=f32) * scale + attn_bias
            s = s - jnp.max(s, axis=-1, keepdims=True)       # numerical safety
            p = jnp.exp(s)
            p = p * pl.reciprocal(jnp.sum(p, axis=-1, keepdims=True), approx=True)
            ctx_heads.append(jnp.dot(p, vh, preferred_element_type=f32))   # (BP, DH)
        ctx = jnp.concatenate(ctx_heads, axis=-1)            # (BP, H)

        # ----- single output projection + residual + LN ----------------------
        lay = OFF_LAYER + l * LAYER_STRIDE
        attn = (jnp.dot(ctx, rows(lay + L_WO, H), preferred_element_type=f32)
                + row(lay + L_BO))
        attn = ln(attn + x, row(lay + L_LN1G), row(lay + L_LN1B))

        # ----- feed-forward: dense -> gelu(erf) -> dense -> residual -> LN ---
        fb = l * F1_STRIDE
        inter = (jnp.dot(attn, sf1_ref[fb:fb + H, :], preferred_element_type=f32)
                 + sf1_ref[fb + H:fb + H + 1, :])
        inter = inter * 0.5 * (1.0 + jax.lax.erf(inter * INV_SQRT2))
        ffn = (jnp.dot(inter, rows(lay + L_WF2, INTER), preferred_element_type=f32)
               + row(lay + L_BF2))
        x = ln(ffn + attn, row(lay + L_LN2G), row(lay + L_LN2B))

    # ---- per-batch mean over pano tokens via a tiny matmul: (B,BP)@(BP,H) ---
    pano_mean = jnp.dot(mean_ref[...], x, preferred_element_type=f32)      # (B, H)

    out_ref[...] = ln(base + pano_mean, row(OFF_LN_FIN_G), row(OFF_LN_FIN_B))


# ---------------------------------------------------------------------------
# Weight packing: 3 lane-dense slabs
# ---------------------------------------------------------------------------
def pack_params(p):
    f32 = jnp.float32

    # ---- slab_h: everything with last dim H, stacked along rows ------------
    pieces = [
        p["img_w"],                                             # 64 rows  [0:64]
        p["ang_w"],                                             # 8        [64:72]
        p["pimg_w"],                                            # 64       [72:136]
        p["pang_w"],                                            # 8        [136:144]
        jnp.stack([p["img_b"], p["ang_b"], p["pimg_b"], p["pang_b"]], 0),   # 4  [144:148]
        jnp.zeros((4, H), f32),                                 # pad -> 152
        jnp.stack([p["img_ln_g"], p["img_ln_b"], p["ang_ln_g"], p["ang_ln_b"],
                   p["pimg_ln_g"], p["pimg_ln_b"], p["pang_ln_g"], p["pang_ln_b"],
                   p["fin_ln_g"], p["fin_ln_b"]], 0),           # 10       [152:162]
        jnp.zeros((6, H), f32),                                 # pad -> 168
    ]
    for lyr in p["pano_layers"]:
        pieces += [
            lyr["wo"],                                          # 32 rows  [+0:+32]
            lyr["w2"],                                          # 64       [+32:+96]
            jnp.stack([lyr["bo"], lyr["b2"], lyr["ln1_g"], lyr["ln1_b"],
                       lyr["ln2_g"], lyr["ln2_b"]], 0),         # 6        [+96:+102]
            jnp.zeros((2, H), f32),                             # pad -> 104 per layer
        ]
    slab_h = jnp.concatenate(pieces, axis=0)
    assert slab_h.shape == (SLAB_H_ROWS, H)

    # ---- slab_qkv: per layer [Wqkv (H,3H); bqkv (1,3H); pad] ----------------
    qkv_blocks = []
    for lyr in p["pano_layers"]:
        wqkv = jnp.concatenate([lyr["wq"], lyr["wk"], lyr["wv"]], axis=1)   # (H, 3H)
        bqkv = jnp.concatenate([lyr["bq"], lyr["bk"], lyr["bv"]], 0).reshape(1, 3 * H)
        qkv_blocks.append(jnp.concatenate(
            [wqkv, bqkv, jnp.zeros((QKV_STRIDE - H - 1, 3 * H), f32)], axis=0))
    slab_qkv = jnp.concatenate(qkv_blocks, axis=0)              # (L*40, 96)

    # ---- slab_f1: per layer [W1 (H,INTER); b1 (1,INTER); pad] ---------------
    f1_blocks = []
    for lyr in p["pano_layers"]:
        f1_blocks.append(jnp.concatenate(
            [lyr["w1"], lyr["b1"].reshape(1, INTER),
             jnp.zeros((F1_STRIDE - H - 1, INTER), f32)], axis=0))
    slab_f1 = jnp.concatenate(f1_blocks, axis=0)                # (L*40, 64)

    return slab_h, slab_qkv, slab_f1


# ---------------------------------------------------------------------------
# Wrapper: single gridless pallas_call, whole arrays resident in VMEM
# ---------------------------------------------------------------------------
def history_embeddings_forward(params, img_feats, ang_feats, pos_ids,
                               pano_img_feats, pano_ang_feats):
    Bq, P, _ = pano_img_feats.shape
    bp = Bq * P

    slab_h, slab_qkv, slab_f1 = pack_params(params)
    # Embedding-table lookups (position + type) are trivial gathers done in the wrapper.
    posty = params["pos_emb"][pos_ids] + params["type_emb"][0]            # (B, H)
    pimg_flat = pano_img_feats.reshape(bp, FIMG)
    pang_flat = pano_ang_feats.reshape(bp, FANG)

    # Block-diagonal additive attention bias (rows attend within their batch element;
    # extended_pano_masks in the module is all zeros) and the per-batch mean matrix --
    # tiny constants, precomputed on host instead of iota+where in the kernel body.
    bid = jnp.arange(bp, dtype=jnp.int32) // P
    attn_bias = jnp.where(bid[:, None] == bid[None, :], 0.0, -1e9).astype(jnp.float32)
    mean_mat = jnp.where(jnp.arange(Bq, dtype=jnp.int32)[:, None] == bid[None, :],
                         1.0 / P, 0.0).astype(jnp.float32)                # (B, BP)

    inputs = (img_feats, ang_feats, pimg_flat, pang_flat, posty,
              attn_bias, mean_mat, slab_h, slab_qkv, slab_f1)

    return pl.pallas_call(
        hist_emb_kernel,
        out_shape=jax.ShapeDtypeStruct((Bq, H), jnp.float32),
        in_specs=[pl.BlockSpec(memory_space=pltpu.MemorySpace.VMEM) for _ in inputs],
        out_specs=pl.BlockSpec(memory_space=pltpu.MemorySpace.VMEM),
    )(*inputs)


# ---------------------------------------------------------------------------
# Deterministic parameter init (synthetic, JAX-native (in, out) weight layout)
# ---------------------------------------------------------------------------
def init_params(key):
    def nrm(k, shape, s=0.05):
        return jax.random.normal(k, shape, jnp.float32) * s

    keys = iter(jax.random.split(key, 64))
    p = {
        "img_w": nrm(next(keys), (FIMG, H)), "img_b": nrm(next(keys), (H,)),
        "img_ln_g": jnp.full((H,), 1.05, jnp.float32), "img_ln_b": jnp.full((H,), 0.02, jnp.float32),
        "ang_w": nrm(next(keys), (FANG, H)), "ang_b": nrm(next(keys), (H,)),
        "ang_ln_g": jnp.full((H,), 0.95, jnp.float32), "ang_ln_b": jnp.full((H,), -0.01, jnp.float32),
        "pimg_w": nrm(next(keys), (FIMG, H)), "pimg_b": nrm(next(keys), (H,)),
        "pimg_ln_g": jnp.full((H,), 1.10, jnp.float32), "pimg_ln_b": jnp.full((H,), 0.03, jnp.float32),
        "pang_w": nrm(next(keys), (FANG, H)), "pang_b": nrm(next(keys), (H,)),
        "pang_ln_g": jnp.full((H,), 0.90, jnp.float32), "pang_ln_b": jnp.full((H,), -0.02, jnp.float32),
        "pos_emb": nrm(next(keys), (MAX_STEPS, H), 0.2),
        "type_emb": nrm(next(keys), (1, H), 0.2),
        "fin_ln_g": jnp.full((H,), 1.00, jnp.float32), "fin_ln_b": jnp.full((H,), 0.01, jnp.float32),
        "pano_layers": [],
    }
    for _ in range(NUM_PANO_LAYERS):
        p["pano_layers"].append({
            "wq": nrm(next(keys), (H, H)), "bq": nrm(next(keys), (H,)),
            "wk": nrm(next(keys), (H, H)), "bk": nrm(next(keys), (H,)),
            "wv": nrm(next(keys), (H, H)), "bv": nrm(next(keys), (H,)),
            "wo": nrm(next(keys), (H, H)), "bo": nrm(next(keys), (H,)),
            "ln1_g": jnp.full((H,), 1.02, jnp.float32), "ln1_b": jnp.full((H,), 0.01, jnp.float32),
            "w1": nrm(next(keys), (H, INTER)), "b1": nrm(next(keys), (INTER,)),
            "w2": nrm(next(keys), (INTER, H)), "b2": nrm(next(keys), (H,)),
            "ln2_g": jnp.full((H,), 0.98, jnp.float32), "ln2_b": jnp.full((H,), -0.01, jnp.float32),
        })
    return p


# ---------------------------------------------------------------------------
# Pure-JAX reference (mirrors the PyTorch module in eval mode)
# ---------------------------------------------------------------------------
def reference_forward(params, img_feats, ang_feats, pos_ids, pano_img_feats, pano_ang_feats):
    def ln(x, g, b):
        mean = x.mean(-1, keepdims=True)
        var = ((x - mean) ** 2).mean(-1, keepdims=True)
        return (x - mean) / jnp.sqrt(var + LN_EPS) * g + b

    emb = (ln(img_feats @ params["img_w"] + params["img_b"], params["img_ln_g"], params["img_ln_b"])
           + ln(ang_feats @ params["ang_w"] + params["ang_b"], params["ang_ln_g"], params["ang_ln_b"])
           + params["pos_emb"][pos_ids] + params["type_emb"][0])

    x = (ln(pano_img_feats @ params["pimg_w"] + params["pimg_b"],
            params["pimg_ln_g"], params["pimg_ln_b"])
         + ln(pano_ang_feats @ params["pang_w"] + params["pang_b"],
              params["pang_ln_g"], params["pang_ln_b"]))

    Bq, P, _ = pano_img_feats.shape
    for L in params["pano_layers"]:
        q = x @ L["wq"] + L["bq"]
        k = x @ L["wk"] + L["bk"]
        v = x @ L["wv"] + L["bv"]

        def split(t):
            return t.reshape(Bq, P, NH, DH).transpose(0, 2, 1, 3)

        qh, kh, vh = split(q), split(k), split(v)
        scores = jnp.einsum("bhqd,bhkd->bhqk", qh, kh) / math.sqrt(DH)
        # extended_pano_masks is all zeros in the module -> no additive mask term
        probs = jax.nn.softmax(scores, axis=-1)
        ctx = jnp.einsum("bhqk,bhkd->bhqd", probs, vh).transpose(0, 2, 1, 3).reshape(Bq, P, H)
        attn = ln(ctx @ L["wo"] + L["bo"] + x, L["ln1_g"], L["ln1_b"])
        inter = attn @ L["w1"] + L["b1"]
        inter = inter * 0.5 * (1.0 + jax.lax.erf(inter / math.sqrt(2.0)))
        x = ln(inter @ L["w2"] + L["b2"] + attn, L["ln2_g"], L["ln2_b"])

    pano_mean = x.mean(axis=1)                                          # (B, H)
    return ln(emb + pano_mean, params["fin_ln_g"], params["fin_ln_b"])


# ---------------------------------------------------------------------------
# Main
# ---------------------------------------------------------------------------
if __name__ == "__main__":
    key = jax.random.PRNGKey(0)
    k_img, k_ang, k_pimg, k_pang, k_par = jax.random.split(key, 5)

    img_feats = jax.random.normal(k_img, (B, FIMG), jnp.float32)
    ang_feats = jax.random.normal(k_ang, (B, FANG), jnp.float32)
    pos_ids = jnp.array([3, 7], dtype=jnp.int32)
    pano_img_feats = jax.random.normal(k_pimg, (B, PANO_LEN, FIMG), jnp.float32)
    pano_ang_feats = jax.random.normal(k_pang, (B, PANO_LEN, FANG), jnp.float32)

    params = init_params(k_par)

    out = history_embeddings_forward(params, img_feats, ang_feats, pos_ids,
                                     pano_img_feats, pano_ang_feats)
    out = jax.block_until_ready(out)

    ref = reference_forward(params, img_feats, ang_feats, pos_ids,
                            pano_img_feats, pano_ang_feats)
    assert out.shape == (B, H)
    # Tolerance 2e-3: the kernel uses the EUP approximate reciprocal for the softmax
    # denominator (pl.reciprocal(approx=True)); all other math is exact float32.
    assert jnp.allclose(out, ref, rtol=2e-3, atol=2e-3), "Pallas output mismatch vs reference"

    print("KERNEL_OK")
</pallas_src>

<mosaic_0001>
module attributes {stable_mosaic.version = 11 : i64} {
  func.func @hist_emb_kernel(%arg0: memref<2x64xf32, #tpu.memory_space<vmem>>, %arg1: memref<2x8xf32, #tpu.memory_space<vmem>>, %arg2: memref<16x64xf32, #tpu.memory_space<vmem>>, %arg3: memref<16x8xf32, #tpu.memory_space<vmem>>, %arg4: memref<2x32xf32, #tpu.memory_space<vmem>>, %arg5: memref<16x16xf32, #tpu.memory_space<vmem>>, %arg6: memref<2x16xf32, #tpu.memory_space<vmem>>, %arg7: memref<376x32xf32, #tpu.memory_space<vmem>>, %arg8: memref<80x96xf32, #tpu.memory_space<vmem>>, %arg9: memref<80x64xf32, #tpu.memory_space<vmem>>, %arg10: memref<2x32xf32, #tpu.memory_space<vmem>>) attributes {dimension_semantics = [], scalar_prefetch = 0 : i64, scratch_operands = 0 : i64, tpu.core_type = #tpu.core_type<tc>} {
    %c0 = arith.constant 0 : index
    %c0_0 = arith.constant 0 : index
    %0 = vector.load %arg0[%c0, %c0_0] : memref<2x64xf32, #tpu.memory_space<vmem>>, vector<2x64xf32>
    %c0_1 = arith.constant 0 : index
    %c0_2 = arith.constant 0 : index
    %1 = vector.load %arg7[%c0_1, %c0_2] : memref<376x32xf32, #tpu.memory_space<vmem>>, vector<64x32xf32>
    %cst = arith.constant dense<0.000000e+00> : vector<2x32xf32>
    %2 = tpu.matmul %0, %1, %cst {dimension_numbers = #tpu.dot_dimension_numbers<[1], [0], [0], [1], [0, 0, 1, 1], [], []>} : vector<2x64xf32>, vector<64x32xf32>, vector<2x32xf32> -> vector<2x32xf32>
    %c144 = arith.constant 144 : index
    %c0_3 = arith.constant 0 : index
    %3 = vector.load %arg7[%c144, %c0_3] : memref<376x32xf32, #tpu.memory_space<vmem>>, vector<1x32xf32>
    %4 = vector.broadcast %3 : vector<1x32xf32> to vector<2x32xf32>
    %5 = arith.addf %2, %4 : vector<2x32xf32>
    %c152 = arith.constant 152 : index
    %c0_4 = arith.constant 0 : index
    %6 = vector.load %arg7[%c152, %c0_4] : memref<376x32xf32, #tpu.memory_space<vmem>>, vector<1x32xf32>
    %c153 = arith.constant 153 : index
    %c0_5 = arith.constant 0 : index
    %7 = vector.load %arg7[%c153, %c0_5] : memref<376x32xf32, #tpu.memory_space<vmem>>, vector<1x32xf32>
    %cst_6 = arith.constant dense<0.000000e+00> : vector<2xf32>
    %8 = vector.multi_reduction <add>, %5, %cst_6 [1] : vector<2x32xf32> to vector<2xf32>
    %9 = vector.shape_cast %8 : vector<2xf32> to vector<2x1xf32>
    %cst_7 = arith.constant 3.200000e+01 : f32
    %10 = vector.broadcast %cst_7 : f32 to vector<2x1xf32>
    %11 = arith.divf %9, %10 : vector<2x1xf32>
    %12 = vector.broadcast %11 : vector<2x1xf32> to vector<2x32xf32>
    %13 = arith.subf %5, %12 : vector<2x32xf32>
    %14 = arith.mulf %13, %13 : vector<2x32xf32>
    %cst_8 = arith.constant dense<0.000000e+00> : vector<2xf32>
    %15 = vector.multi_reduction <add>, %14, %cst_8 [1] : vector<2x32xf32> to vector<2xf32>
    %16 = vector.shape_cast %15 : vector<2xf32> to vector<2x1xf32>
    %cst_9 = arith.constant 3.200000e+01 : f32
    %17 = vector.broadcast %cst_9 : f32 to vector<2x1xf32>
    %18 = arith.divf %16, %17 : vector<2x1xf32>
    %19 = vector.broadcast %11 : vector<2x1xf32> to vector<2x32xf32>
    %20 = arith.subf %5, %19 : vector<2x32xf32>
    %cst_10 = arith.constant 9.99999996E-13 : f32
    %21 = vector.broadcast %cst_10 : f32 to vector<2x1xf32>
    %22 = arith.addf %18, %21 : vector<2x1xf32>
    %23 = math.rsqrt %22 : vector<2x1xf32>
    %24 = vector.broadcast %23 : vector<2x1xf32> to vector<2x32xf32>
    %25 = arith.mulf %20, %24 : vector<2x32xf32>
    %26 = vector.broadcast %6 : vector<1x32xf32> to vector<2x32xf32>
    %27 = arith.mulf %25, %26 : vector<2x32xf32>
    %28 = vector.broadcast %7 : vector<1x32xf32> to vector<2x32xf32>
    %29 = arith.addf %27, %28 : vector<2x32xf32>
    %c0_11 = arith.constant 0 : index
    %c0_12 = arith.constant 0 : index
    %30 = vector.load %arg1[%c0_11, %c0_12] : memref<2x8xf32, #tpu.memory_space<vmem>>, vector<2x8xf32>
    %c64 = arith.constant 64 : index
    %c0_13 = arith.constant 0 : index
    %31 = vector.load %arg7[%c64, %c0_13] : memref<376x32xf32, #tpu.memory_space<vmem>>, vector<8x32xf32>
    %cst_14 = arith.constant dense<0.000000e+00> : vector<2x32xf32>
    %32 = tpu.matmul %30, %31, %cst_14 {dimension_numbers = #tpu.dot_dimension_numbers<[1], [0], [0], [1], [0, 0, 1, 1], [], []>} : vector<2x8xf32>, vector<8x32xf32>, vector<2x32xf32> -> vector<2x32xf32>
    %c145 = arith.constant 145 : index
    %c0_15 = arith.constant 0 : index
    %33 = vector.load %arg7[%c145, %c0_15] : memref<376x32xf32, #tpu.memory_space<vmem>>, vector<1x32xf32>
    %34 = vector.broadcast %33 : vector<1x32xf32> to vector<2x32xf32>
    %35 = arith.addf %32, %34 : vector<2x32xf32>
    %c154 = arith.constant 154 : index
    %c0_16 = arith.constant 0 : index
    %36 = vector.load %arg7[%c154, %c0_16] : memref<376x32xf32, #tpu.memory_space<vmem>>, vector<1x32xf32>
    %c155 = arith.constant 155 : index
    %c0_17 = arith.constant 0 : index
    %37 = vector.load %arg7[%c155, %c0_17] : memref<376x32xf32, #tpu.memory_space<vmem>>, vector<1x32xf32>
    %cst_18 = arith.constant dense<0.000000e+00> : vector<2xf32>
    %38 = vector.multi_reduction <add>, %35, %cst_18 [1] : vector<2x32xf32> to vector<2xf32>
    %39 = vector.shape_cast %38 : vector<2xf32> to vector<2x1xf32>
    %cst_19 = arith.constant 3.200000e+01 : f32
    %40 = vector.broadcast %cst_19 : f32 to vector<2x1xf32>
    %41 = arith.divf %39, %40 : vector<2x1xf32>
    %42 = vector.broadcast %41 : vector<2x1xf32> to vector<2x32xf32>
    %43 = arith.subf %35, %42 : vector<2x32xf32>
    %44 = arith.mulf %43, %43 : vector<2x32xf32>
    %cst_20 = arith.constant dense<0.000000e+00> : vector<2xf32>
    %45 = vector.multi_reduction <add>, %44, %cst_20 [1] : vector<2x32xf32> to vector<2xf32>
    %46 = vector.shape_cast %45 : vector<2xf32> to vector<2x1xf32>
    %cst_21 = arith.constant 3.200000e+01 : f32
    %47 = vector.broadcast %cst_21 : f32 to vector<2x1xf32>
    %48 = arith.divf %46, %47 : vector<2x1xf32>
    %49 = vector.broadcast %41 : vector<2x1xf32> to vector<2x32xf32>
    %50 = arith.subf %35, %49 : vector<2x32xf32>
    %cst_22 = arith.constant 9.99999996E-13 : f32
    %51 = vector.broadcast %cst_22 : f32 to vector<2x1xf32>
    %52 = arith.addf %48, %51 : vector<2x1xf32>
    %53 = math.rsqrt %52 : vector<2x1xf32>
    %54 = vector.broadcast %53 : vector<2x1xf32> to vector<2x32xf32>
    %55 = arith.mulf %50, %54 : vector<2x32xf32>
    %56 = vector.broadcast %36 : vector<1x32xf32> to vector<2x32xf32>
    %57 = arith.mulf %55, %56 : vector<2x32xf32>
    %58 = vector.broadcast %37 : vector<1x32xf32> to vector<2x32xf32>
    %59 = arith.addf %57, %58 : vector<2x32xf32>
    %60 = arith.addf %29, %59 : vector<2x32xf32>
    %c0_23 = arith.constant 0 : index
    %c0_24 = arith.constant 0 : index
    %61 = vector.load %arg4[%c0_23, %c0_24] : memref<2x32xf32, #tpu.memory_space<vmem>>, vector<2x32xf32>
    %62 = arith.addf %60, %61 : vector<2x32xf32>
    %c0_25 = arith.constant 0 : index
    %c0_26 = arith.constant 0 : index
    %63 = vector.load %arg2[%c0_25, %c0_26] : memref<16x64xf32, #tpu.memory_space<vmem>>, vector<16x64xf32>
    %c72 = arith.constant 72 : index
    %c0_27 = arith.constant 0 : index
    %64 = vector.load %arg7[%c72, %c0_27] : memref<376x32xf32, #tpu.memory_space<vmem>>, vector<64x32xf32>
    %cst_28 = arith.constant dense<0.000000e+00> : vector<16x32xf32>
    %65 = tpu.matmul %63, %64, %cst_28 {dimension_numbers = #tpu.dot_dimension_numbers<[1], [0], [0], [1], [0, 0, 1, 1], [], []>} : vector<16x64xf32>, vector<64x32xf32>, vector<16x32xf32> -> vector<16x32xf32>
    %c146 = arith.constant 146 : index
    %c0_29 = arith.constant 0 : index
    %66 = vector.load %arg7[%c146, %c0_29] : memref<376x32xf32, #tpu.memory_space<vmem>>, vector<1x32xf32>
    %67 = vector.broadcast %66 : vector<1x32xf32> to vector<16x32xf32>
    %68 = arith.addf %65, %67 : vector<16x32xf32>
    %c156 = arith.constant 156 : index
    %c0_30 = arith.constant 0 : index
    %69 = vector.load %arg7[%c156, %c0_30] : memref<376x32xf32, #tpu.memory_space<vmem>>, vector<1x32xf32>
    %c157 = arith.constant 157 : index
    %c0_31 = arith.constant 0 : index
    %70 = vector.load %arg7[%c157, %c0_31] : memref<376x32xf32, #tpu.memory_space<vmem>>, vector<1x32xf32>
    %cst_32 = arith.constant dense<0.000000e+00> : vector<16xf32>
    %71 = vector.multi_reduction <add>, %68, %cst_32 [1] : vector<16x32xf32> to vector<16xf32>
    %72 = vector.shape_cast %71 : vector<16xf32> to vector<16x1xf32>
    %cst_33 = arith.constant 3.200000e+01 : f32
    %73 = vector.broadcast %cst_33 : f32 to vector<16x1xf32>
    %74 = arith.divf %72, %73 : vector<16x1xf32>
    %75 = vector.broadcast %74 : vector<16x1xf32> to vector<16x32xf32>
    %76 = arith.subf %68, %75 : vector<16x32xf32>
    %77 = arith.mulf %76, %76 : vector<16x32xf32>
    %cst_34 = arith.constant dense<0.000000e+00> : vector<16xf32>
    %78 = vector.multi_reduction <add>, %77, %cst_34 [1] : vector<16x32xf32> to vector<16xf32>
    %79 = vector.shape_cast %78 : vector<16xf32> to vector<16x1xf32>
    %cst_35 = arith.constant 3.200000e+01 : f32
    %80 = vector.broadcast %cst_35 : f32 to vector<16x1xf32>
    %81 = arith.divf %79, %80 : vector<16x1xf32>
    %82 = vector.broadcast %74 : vector<16x1xf32> to vector<16x32xf32>
    %83 = arith.subf %68, %82 : vector<16x32xf32>
    %cst_36 = arith.constant 9.99999996E-13 : f32
    %84 = vector.broadcast %cst_36 : f32 to vector<16x1xf32>
    %85 = arith.addf %81, %84 : vector<16x1xf32>
    %86 = math.rsqrt %85 : vector<16x1xf32>
    %87 = vector.broadcast %86 : vector<16x1xf32> to vector<16x32xf32>
    %88 = arith.mulf %83, %87 : vector<16x32xf32>
    %89 = vector.broadcast %69 : vector<1x32xf32> to vector<16x32xf32>
    %90 = arith.mulf %88, %89 : vector<16x32xf32>
    %91 = vector.broadcast %70 : vector<1x32xf32> to vector<16x32xf32>
    %92 = arith.addf %90, %91 : vector<16x32xf32>
    %c0_37 = arith.constant 0 : index
    %c0_38 = arith.constant 0 : index
    %93 = vector.load %arg3[%c0_37, %c0_38] : memref<16x8xf32, #tpu.memory_space<vmem>>, vector<16x8xf32>
    %c136 = arith.constant 136 : index
    %c0_39 = arith.constant 0 : index
    %94 = vector.load %arg7[%c136, %c0_39] : memref<376x32xf32, #tpu.memory_space<vmem>>, vector<8x32xf32>
    %cst_40 = arith.constant dense<0.000000e+00> : vector<16x32xf32>
    %95 = tpu.matmul %93, %94, %cst_40 {dimension_numbers = #tpu.dot_dimension_numbers<[1], [0], [0], [1], [0, 0, 1, 1], [], []>} : vector<16x8xf32>, vector<8x32xf32>, vector<16x32xf32> -> vector<16x32xf32>
    %c147 = arith.constant 147 : index
    %c0_41 = arith.constant 0 : index
    %96 = vector.load %arg7[%c147, %c0_41] : memref<376x32xf32, #tpu.memory_space<vmem>>, vector<1x32xf32>
    %97 = vector.broadcast %96 : vector<1x32xf32> to vector<16x32xf32>
    %98 = arith.addf %95, %97 : vector<16x32xf32>
    %c158 = arith.constant 158 : index
    %c0_42 = arith.constant 0 : index
    %99 = vector.load %arg7[%c158, %c0_42] : memref<376x32xf32, #tpu.memory_space<vmem>>, vector<1x32xf32>
    %c159 = arith.constant 159 : index
    %c0_43 = arith.constant 0 : index
    %100 = vector.load %arg7[%c159, %c0_43] : memref<376x32xf32, #tpu.memory_space<vmem>>, vector<1x32xf32>
    %cst_44 = arith.constant dense<0.000000e+00> : vector<16xf32>
    %101 = vector.multi_reduction <add>, %98, %cst_44 [1] : vector<16x32xf32> to vector<16xf32>
    %102 = vector.shape_cast %101 : vector<16xf32> to vector<16x1xf32>
    %cst_45 = arith.constant 3.200000e+01 : f32
    %103 = vector.broadcast %cst_45 : f32 to vector<16x1xf32>
    %104 = arith.divf %102, %103 : vector<16x1xf32>
    %105 = vector.broadcast %104 : vector<16x1xf32> to vector<16x32xf32>
    %106 = arith.subf %98, %105 : vector<16x32xf32>
    %107 = arith.mulf %106, %106 : vector<16x32xf32>
    %cst_46 = arith.constant dense<0.000000e+00> : vector<16xf32>
    %108 = vector.multi_reduction <add>, %107, %cst_46 [1] : vector<16x32xf32> to vector<16xf32>
    %109 = vector.shape_cast %108 : vector<16xf32> to vector<16x1xf32>
    %cst_47 = arith.constant 3.200000e+01 : f32
    %110 = vector.broadcast %cst_47 : f32 to vector<16x1xf32>
    %111 = arith.divf %109, %110 : vector<16x1xf32>
    %112 = vector.broadcast %104 : vector<16x1xf32> to vector<16x32xf32>
    %113 = arith.subf %98, %112 : vector<16x32xf32>
    %cst_48 = arith.constant 9.99999996E-13 : f32
    %114 = vector.broadcast %cst_48 : f32 to vector<16x1xf32>
    %115 = arith.addf %111, %114 : vector<16x1xf32>
    %116 = math.rsqrt %115 : vector<16x1xf32>
    %117 = vector.broadcast %116 : vector<16x1xf32> to vector<16x32xf32>
    %118 = arith.mulf %113, %117 : vector<16x32xf32>
    %119 = vector.broadcast %99 : vector<1x32xf32> to vector<16x32xf32>
    %120 = arith.mulf %118, %119 : vector<16x32xf32>
    %121 = vector.broadcast %100 : vector<1x32xf32> to vector<16x32xf32>
    %122 = arith.addf %120, %121 : vector<16x32xf32>
    %123 = arith.addf %92, %122 : vector<16x32xf32>
    %c0_49 = arith.constant 0 : index
    %c0_50 = arith.constant 0 : index
    %124 = vector.load %arg5[%c0_49, %c0_50] : memref<16x16xf32, #tpu.memory_space<vmem>>, vector<16x16xf32>
    %c0_51 = arith.constant 0 : index
    %c0_52 = arith.constant 0 : index
    %125 = vector.load %arg8[%c0_51, %c0_52] : memref<80x96xf32, #tpu.memory_space<vmem>>, vector<32x96xf32>
    %cst_53 = arith.constant dense<0.000000e+00> : vector<16x96xf32>
    %126 = tpu.matmul %123, %125, %cst_53 {dimension_numbers = #tpu.dot_dimension_numbers<[1], [0], [0], [1], [0, 0, 1, 1], [], []>} : vector<16x32xf32>, vector<32x96xf32>, vector<16x96xf32> -> vector<16x96xf32>
    %c32 = arith.constant 32 : index
    %c0_54 = arith.constant 0 : index
    %127 = vector.load %arg8[%c32, %c0_54] : memref<80x96xf32, #tpu.memory_space<vmem>>, vector<1x96xf32>
    %128 = vector.broadcast %127 : vector<1x96xf32> to vector<16x96xf32>
    %129 = arith.addf %126, %128 : vector<16x96xf32>
    %130 = vector.extract_strided_slice %129 {offsets = [0, 0], sizes = [16, 8], strides = [1, 1]} : vector<16x96xf32> to vector<16x8xf32>
    %131 = vector.extract_strided_slice %129 {offsets = [0, 32], sizes = [16, 8], strides = [1, 1]} : vector<16x96xf32> to vector<16x8xf32>
    %132 = vector.extract_strided_slice %129 {offsets = [0, 64], sizes = [16, 8], strides = [1, 1]} : vector<16x96xf32> to vector<16x8xf32>
    %cst_55 = arith.constant dense<0.000000e+00> : vector<16x16xf32>
    %133 = tpu.matmul %130, %131, %cst_55 {dimension_numbers = #tpu.dot_dimension_numbers<[1], [1], [0], [0], [0, 0, 1, 0], [], []>} : vector<16x8xf32>, vector<16x8xf32>, vector<16x16xf32> -> vector<16x16xf32>
    %cst_56 = arith.constant 0.353553385 : f32
    %134 = vector.broadcast %cst_56 : f32 to vector<16x16xf32>
    %135 = arith.mulf %133, %134 : vector<16x16xf32>
    %136 = arith.addf %135, %124 : vector<16x16xf32>
    %cst_57 = arith.constant dense<0xFF800000> : vector<16xf32>
    %137 = vector.multi_reduction <maximumf>, %136, %cst_57 [1] : vector<16x16xf32> to vector<16xf32>
    %138 = vector.shape_cast %137 : vector<16xf32> to vector<16x1xf32>
    %139 = vector.broadcast %138 : vector<16x1xf32> to vector<16x16xf32>
    %140 = arith.subf %136, %139 : vector<16x16xf32>
    %141 = math.exp %140 : vector<16x16xf32>
    %cst_58 = arith.constant dense<0.000000e+00> : vector<16xf32>
    %142 = vector.multi_reduction <add>, %141, %cst_58 [1] : vector<16x16xf32> to vector<16xf32>
    %143 = vector.shape_cast %142 : vector<16xf32> to vector<16x1xf32>
    %144 = tpu.reciprocal %143 {approx = true} : vector<16x1xf32> -> vector<16x1xf32>
    %145 = vector.broadcast %144 : vector<16x1xf32> to vector<16x16xf32>
    %146 = arith.mulf %141, %145 : vector<16x16xf32>
    %cst_59 = arith.constant dense<0.000000e+00> : vector<16x8xf32>
    %147 = tpu.matmul %146, %132, %cst_59 {dimension_numbers = #tpu.dot_dimension_numbers<[1], [0], [0], [1], [0, 0, 1, 1], [], []>} : vector<16x16xf32>, vector<16x8xf32>, vector<16x8xf32> -> vector<16x8xf32>
    %148 = vector.extract_strided_slice %129 {offsets = [0, 8], sizes = [16, 8], strides = [1, 1]} : vector<16x96xf32> to vector<16x8xf32>
    %149 = vector.extract_strided_slice %129 {offsets = [0, 40], sizes = [16, 8], strides = [1, 1]} : vector<16x96xf32> to vector<16x8xf32>
    %150 = vector.extract_strided_slice %129 {offsets = [0, 72], sizes = [16, 8], strides = [1, 1]} : vector<16x96xf32> to vector<16x8xf32>
    %cst_60 = arith.constant dense<0.000000e+00> : vector<16x16xf32>
    %151 = tpu.matmul %148, %149, %cst_60 {dimension_numbers = #tpu.dot_dimension_numbers<[1], [1], [0], [0], [0, 0, 1, 0], [], []>} : vector<16x8xf32>, vector<16x8xf32>, vector<16x16xf32> -> vector<16x16xf32>
    %cst_61 = arith.constant 0.353553385 : f32
    %152 = vector.broadcast %cst_61 : f32 to vector<16x16xf32>
    %153 = arith.mulf %151, %152 : vector<16x16xf32>
    %154 = arith.addf %153, %124 : vector<16x16xf32>
    %cst_62 = arith.constant dense<0xFF800000> : vector<16xf32>
    %155 = vector.multi_reduction <maximumf>, %154, %cst_62 [1] : vector<16x16xf32> to vector<16xf32>
    %156 = vector.shape_cast %155 : vector<16xf32> to vector<16x1xf32>
    %157 = vector.broadcast %156 : vector<16x1xf32> to vector<16x16xf32>
    %158 = arith.subf %154, %157 : vector<16x16xf32>
    %159 = math.exp %158 : vector<16x16xf32>
    %cst_63 = arith.constant dense<0.000000e+00> : vector<16xf32>
    %160 = vector.multi_reduction <add>, %159, %cst_63 [1] : vector<16x16xf32> to vector<16xf32>
    %161 = vector.shape_cast %160 : vector<16xf32> to vector<16x1xf32>
    %162 = tpu.reciprocal %161 {approx = true} : vector<16x1xf32> -> vector<16x1xf32>
    %163 = vector.broadcast %162 : vector<16x1xf32> to vector<16x16xf32>
    %164 = arith.mulf %159, %163 : vector<16x16xf32>
    %cst_64 = arith.constant dense<0.000000e+00> : vector<16x8xf32>
    %165 = tpu.matmul %164, %150, %cst_64 {dimension_numbers = #tpu.dot_dimension_numbers<[1], [0], [0], [1], [0, 0, 1, 1], [], []>} : vector<16x16xf32>, vector<16x8xf32>, vector<16x8xf32> -> vector<16x8xf32>
    %166 = vector.extract_strided_slice %129 {offsets = [0, 16], sizes = [16, 8], strides = [1, 1]} : vector<16x96xf32> to vector<16x8xf32>
    %167 = vector.extract_strided_slice %129 {offsets = [0, 48], sizes = [16, 8], strides = [1, 1]} : vector<16x96xf32> to vector<16x8xf32>
    %168 = vector.extract_strided_slice %129 {offsets = [0, 80], sizes = [16, 8], strides = [1, 1]} : vector<16x96xf32> to vector<16x8xf32>
    %cst_65 = arith.constant dense<0.000000e+00> : vector<16x16xf32>
    %169 = tpu.matmul %166, %167, %cst_65 {dimension_numbers = #tpu.dot_dimension_numbers<[1], [1], [0], [0], [0, 0, 1, 0], [], []>} : vector<16x8xf32>, vector<16x8xf32>, vector<16x16xf32> -> vector<16x16xf32>
    %cst_66 = arith.constant 0.353553385 : f32
    %170 = vector.broadcast %cst_66 : f32 to vector<16x16xf32>
    %171 = arith.mulf %169, %170 : vector<16x16xf32>
    %172 = arith.addf %171, %124 : vector<16x16xf32>
    %cst_67 = arith.constant dense<0xFF800000> : vector<16xf32>
    %173 = vector.multi_reduction <maximumf>, %172, %cst_67 [1] : vector<16x16xf32> to vector<16xf32>
    %174 = vector.shape_cast %173 : vector<16xf32> to vector<16x1xf32>
    %175 = vector.broadcast %174 : vector<16x1xf32> to vector<16x16xf32>
    %176 = arith.subf %172, %175 : vector<16x16xf32>
    %177 = math.exp %176 : vector<16x16xf32>
    %cst_68 = arith.constant dense<0.000000e+00> : vector<16xf32>
    %178 = vector.multi_reduction <add>, %177, %cst_68 [1] : vector<16x16xf32> to vector<16xf32>
    %179 = vector.shape_cast %178 : vector<16xf32> to vector<16x1xf32>
    %180 = tpu.reciprocal %179 {approx = true} : vector<16x1xf32> -> vector<16x1xf32>
    %181 = vector.broadcast %180 : vector<16x1xf32> to vector<16x16xf32>
    %182 = arith.mulf %177, %181 : vector<16x16xf32>
    %cst_69 = arith.constant dense<0.000000e+00> : vector<16x8xf32>
    %183 = tpu.matmul %182, %168, %cst_69 {dimension_numbers = #tpu.dot_dimension_numbers<[1], [0], [0], [1], [0, 0, 1, 1], [], []>} : vector<16x16xf32>, vector<16x8xf32>, vector<16x8xf32> -> vector<16x8xf32>
    %184 = vector.extract_strided_slice %129 {offsets = [0, 24], sizes = [16, 8], strides = [1, 1]} : vector<16x96xf32> to vector<16x8xf32>
    %185 = vector.extract_strided_slice %129 {offsets = [0, 56], sizes = [16, 8], strides = [1, 1]} : vector<16x96xf32> to vector<16x8xf32>
    %186 = vector.extract_strided_slice %129 {offsets = [0, 88], sizes = [16, 8], strides = [1, 1]} : vector<16x96xf32> to vector<16x8xf32>
    %cst_70 = arith.constant dense<0.000000e+00> : vector<16x16xf32>
    %187 = tpu.matmul %184, %185, %cst_70 {dimension_numbers = #tpu.dot_dimension_numbers<[1], [1], [0], [0], [0, 0, 1, 0], [], []>} : vector<16x8xf32>, vector<16x8xf32>, vector<16x16xf32> -> vector<16x16xf32>
    %cst_71 = arith.constant 0.353553385 : f32
    %188 = vector.broadcast %cst_71 : f32 to vector<16x16xf32>
    %189 = arith.mulf %187, %188 : vector<16x16xf32>
    %190 = arith.addf %189, %124 : vector<16x16xf32>
    %cst_72 = arith.constant dense<0xFF800000> : vector<16xf32>
    %191 = vector.multi_reduction <maximumf>, %190, %cst_72 [1] : vector<16x16xf32> to vector<16xf32>
    %192 = vector.shape_cast %191 : vector<16xf32> to vector<16x1xf32>
    %193 = vector.broadcast %192 : vector<16x1xf32> to vector<16x16xf32>
    %194 = arith.subf %190, %193 : vector<16x16xf32>
    %195 = math.exp %194 : vector<16x16xf32>
    %cst_73 = arith.constant dense<0.000000e+00> : vector<16xf32>
    %196 = vector.multi_reduction <add>, %195, %cst_73 [1] : vector<16x16xf32> to vector<16xf32>
    %197 = vector.shape_cast %196 : vector<16xf32> to vector<16x1xf32>
    %198 = tpu.reciprocal %197 {approx = true} : vector<16x1xf32> -> vector<16x1xf32>
    %199 = vector.broadcast %198 : vector<16x1xf32> to vector<16x16xf32>
    %200 = arith.mulf %195, %199 : vector<16x16xf32>
    %cst_74 = arith.constant dense<0.000000e+00> : vector<16x8xf32>
    %201 = tpu.matmul %200, %186, %cst_74 {dimension_numbers = #tpu.dot_dimension_numbers<[1], [0], [0], [1], [0, 0, 1, 1], [], []>} : vector<16x16xf32>, vector<16x8xf32>, vector<16x8xf32> -> vector<16x8xf32>
    %202 = tpu.concatenate %147, %165, %183, %201 in 1 : vector<16x8xf32>, vector<16x8xf32>, vector<16x8xf32>, vector<16x8xf32> -> vector<16x32xf32>
    %c168 = arith.constant 168 : index
    %c0_75 = arith.constant 0 : index
    %203 = vector.load %arg7[%c168, %c0_75] : memref<376x32xf32, #tpu.memory_space<vmem>>, vector<32x32xf32>
    %cst_76 = arith.constant dense<0.000000e+00> : vector<16x32xf32>
    %204 = tpu.matmul %202, %203, %cst_76 {dimension_numbers = #tpu.dot_dimension_numbers<[1], [0], [0], [1], [0, 0, 1, 1], [], []>} : vector<16x32xf32>, vector<32x32xf32>, vector<16x32xf32> -> vector<16x32xf32>
    %c264 = arith.constant 264 : index
    %c0_77 = arith.constant 0 : index
    %205 = vector.load %arg7[%c264, %c0_77] : memref<376x32xf32, #tpu.memory_space<vmem>>, vector<1x32xf32>
    %206 = vector.broadcast %205 : vector<1x32xf32> to vector<16x32xf32>
    %207 = arith.addf %204, %206 : vector<16x32xf32>
    %208 = arith.addf %207, %123 : vector<16x32xf32>
    %c266 = arith.constant 266 : index
    %c0_78 = arith.constant 0 : index
    %209 = vector.load %arg7[%c266, %c0_78] : memref<376x32xf32, #tpu.memory_space<vmem>>, vector<1x32xf32>
    %c267 = arith.constant 267 : index
    %c0_79 = arith.constant 0 : index
    %210 = vector.load %arg7[%c267, %c0_79] : memref<376x32xf32, #tpu.memory_space<vmem>>, vector<1x32xf32>
    %cst_80 = arith.constant dense<0.000000e+00> : vector<16xf32>
    %211 = vector.multi_reduction <add>, %208, %cst_80 [1] : vector<16x32xf32> to vector<16xf32>
    %212 = vector.shape_cast %211 : vector<16xf32> to vector<16x1xf32>
    %cst_81 = arith.constant 3.200000e+01 : f32
    %213 = vector.broadcast %cst_81 : f32 to vector<16x1xf32>
    %214 = arith.divf %212, %213 : vector<16x1xf32>
    %215 = vector.broadcast %214 : vector<16x1xf32> to vector<16x32xf32>
    %216 = arith.subf %208, %215 : vector<16x32xf32>
    %217 = arith.mulf %216, %216 : vector<16x32xf32>
    %cst_82 = arith.constant dense<0.000000e+00> : vector<16xf32>
    %218 = vector.multi_reduction <add>, %217, %cst_82 [1] : vector<16x32xf32> to vector<16xf32>
    %219 = vector.shape_cast %218 : vector<16xf32> to vector<16x1xf32>
    %cst_83 = arith.constant 3.200000e+01 : f32
    %220 = vector.broadcast %cst_83 : f32 to vector<16x1xf32>
    %221 = arith.divf %219, %220 : vector<16x1xf32>
    %222 = vector.broadcast %214 : vector<16x1xf32> to vector<16x32xf32>
    %223 = arith.subf %208, %222 : vector<16x32xf32>
    %cst_84 = arith.constant 9.99999996E-13 : f32
    %224 = vector.broadcast %cst_84 : f32 to vector<16x1xf32>
    %225 = arith.addf %221, %224 : vector<16x1xf32>
    %226 = math.rsqrt %225 : vector<16x1xf32>
    %227 = vector.broadcast %226 : vector<16x1xf32> to vector<16x32xf32>
    %228 = arith.mulf %223, %227 : vector<16x32xf32>
    %229 = vector.broadcast %209 : vector<1x32xf32> to vector<16x32xf32>
    %230 = arith.mulf %228, %229 : vector<16x32xf32>
    %231 = vector.broadcast %210 : vector<1x32xf32> to vector<16x32xf32>
    %232 = arith.addf %230, %231 : vector<16x32xf32>
    %c0_85 = arith.constant 0 : index
    %c0_86 = arith.constant 0 : index
    %233 = vector.load %arg9[%c0_85, %c0_86] : memref<80x64xf32, #tpu.memory_space<vmem>>, vector<32x64xf32>
    %cst_87 = arith.constant dense<0.000000e+00> : vector<16x64xf32>
    %234 = tpu.matmul %232, %233, %cst_87 {dimension_numbers = #tpu.dot_dimension_numbers<[1], [0], [0], [1], [0, 0, 1, 1], [], []>} : vector<16x32xf32>, vector<32x64xf32>, vector<16x64xf32> -> vector<16x64xf32>
    %c32_88 = arith.constant 32 : index
    %c0_89 = arith.constant 0 : index
    %235 = vector.load %arg9[%c32_88, %c0_89] : memref<80x64xf32, #tpu.memory_space<vmem>>, vector<1x64xf32>
    %236 = vector.broadcast %235 : vector<1x64xf32> to vector<16x64xf32>
    %237 = arith.addf %234, %236 : vector<16x64xf32>
    %cst_90 = arith.constant 5.000000e-01 : f32
    %238 = vector.broadcast %cst_90 : f32 to vector<16x64xf32>
    %239 = arith.mulf %237, %238 : vector<16x64xf32>
    %cst_91 = arith.constant 0.707106769 : f32
    %240 = vector.broadcast %cst_91 : f32 to vector<16x64xf32>
    %241 = arith.mulf %237, %240 : vector<16x64xf32>
    %242 = math.erf %241 : vector<16x64xf32>
    %cst_92 = arith.constant 1.000000e+00 : f32
    %243 = vector.broadcast %cst_92 : f32 to vector<16x64xf32>
    %244 = arith.addf %243, %242 : vector<16x64xf32>
    %245 = arith.mulf %239, %244 : vector<16x64xf32>
    %c200 = arith.constant 200 : index
    %c0_93 = arith.constant 0 : index
    %246 = vector.load %arg7[%c200, %c0_93] : memref<376x32xf32, #tpu.memory_space<vmem>>, vector<64x32xf32>
    %cst_94 = arith.constant dense<0.000000e+00> : vector<16x32xf32>
    %247 = tpu.matmul %245, %246, %cst_94 {dimension_numbers = #tpu.dot_dimension_numbers<[1], [0], [0], [1], [0, 0, 1, 1], [], []>} : vector<16x64xf32>, vector<64x32xf32>, vector<16x32xf32> -> vector<16x32xf32>
    %c265 = arith.constant 265 : index
    %c0_95 = arith.constant 0 : index
    %248 = vector.load %arg7[%c265, %c0_95] : memref<376x32xf32, #tpu.memory_space<vmem>>, vector<1x32xf32>
    %249 = vector.broadcast %248 : vector<1x32xf32> to vector<16x32xf32>
    %250 = arith.addf %247, %249 : vector<16x32xf32>
    %251 = arith.addf %250, %232 : vector<16x32xf32>
    %c268 = arith.constant 268 : index
    %c0_96 = arith.constant 0 : index
    %252 = vector.load %arg7[%c268, %c0_96] : memref<376x32xf32, #tpu.memory_space<vmem>>, vector<1x32xf32>
    %c269 = arith.constant 269 : index
    %c0_97 = arith.constant 0 : index
    %253 = vector.load %arg7[%c269, %c0_97] : memref<376x32xf32, #tpu.memory_space<vmem>>, vector<1x32xf32>
    %cst_98 = arith.constant dense<0.000000e+00> : vector<16xf32>
    %254 = vector.multi_reduction <add>, %251, %cst_98 [1] : vector<16x32xf32> to vector<16xf32>
    %255 = vector.shape_cast %254 : vector<16xf32> to vector<16x1xf32>
    %cst_99 = arith.constant 3.200000e+01 : f32
    %256 = vector.broadcast %cst_99 : f32 to vector<16x1xf32>
    %257 = arith.divf %255, %256 : vector<16x1xf32>
    %258 = vector.broadcast %257 : vector<16x1xf32> to vector<16x32xf32>
    %259 = arith.subf %251, %258 : vector<16x32xf32>
    %260 = arith.mulf %259, %259 : vector<16x32xf32>
    %cst_100 = arith.constant dense<0.000000e+00> : vector<16xf32>
    %261 = vector.multi_reduction <add>, %260, %cst_100 [1] : vector<16x32xf32> to vector<16xf32>
    %262 = vector.shape_cast %261 : vector<16xf32> to vector<16x1xf32>
    %cst_101 = arith.constant 3.200000e+01 : f32
    %263 = vector.broadcast %cst_101 : f32 to vector<16x1xf32>
    %264 = arith.divf %262, %263 : vector<16x1xf32>
    %265 = vector.broadcast %257 : vector<16x1xf32> to vector<16x32xf32>
    %266 = arith.subf %251, %265 : vector<16x32xf32>
    %cst_102 = arith.constant 9.99999996E-13 : f32
    %267 = vector.broadcast %cst_102 : f32 to vector<16x1xf32>
    %268 = arith.addf %264, %267 : vector<16x1xf32>
    %269 = math.rsqrt %268 : vector<16x1xf32>
    %270 = vector.broadcast %269 : vector<16x1xf32> to vector<16x32xf32>
    %271 = arith.mulf %266, %270 : vector<16x32xf32>
    %272 = vector.broadcast %252 : vector<1x32xf32> to vector<16x32xf32>
    %273 = arith.mulf %271, %272 : vector<16x32xf32>
    %274 = vector.broadcast %253 : vector<1x32xf32> to vector<16x32xf32>
    %275 = arith.addf %273, %274 : vector<16x32xf32>
    %c40 = arith.constant 40 : index
    %c0_103 = arith.constant 0 : index
    %276 = vector.load %arg8[%c40, %c0_103] : memref<80x96xf32, #tpu.memory_space<vmem>>, vector<32x96xf32>
    %cst_104 = arith.constant dense<0.000000e+00> : vector<16x96xf32>
    %277 = tpu.matmul %275, %276, %cst_104 {dimension_numbers = #tpu.dot_dimension_numbers<[1], [0], [0], [1], [0, 0, 1, 1], [], []>} : vector<16x32xf32>, vector<32x96xf32>, vector<16x96xf32> -> vector<16x96xf32>
    %c72_105 = arith.constant 72 : index
    %c0_106 = arith.constant 0 : index
    %278 = vector.load %arg8[%c72_105, %c0_106] : memref<80x96xf32, #tpu.memory_space<vmem>>, vector<1x96xf32>
    %279 = vector.broadcast %278 : vector<1x96xf32> to vector<16x96xf32>
    %280 = arith.addf %277, %279 : vector<16x96xf32>
    %281 = vector.extract_strided_slice %280 {offsets = [0, 0], sizes = [16, 8], strides = [1, 1]} : vector<16x96xf32> to vector<16x8xf32>
    %282 = vector.extract_strided_slice %280 {offsets = [0, 32], sizes = [16, 8], strides = [1, 1]} : vector<16x96xf32> to vector<16x8xf32>
    %283 = vector.extract_strided_slice %280 {offsets = [0, 64], sizes = [16, 8], strides = [1, 1]} : vector<16x96xf32> to vector<16x8xf32>
    %cst_107 = arith.constant dense<0.000000e+00> : vector<16x16xf32>
    %284 = tpu.matmul %281, %282, %cst_107 {dimension_numbers = #tpu.dot_dimension_numbers<[1], [1], [0], [0], [0, 0, 1, 0], [], []>} : vector<16x8xf32>, vector<16x8xf32>, vector<16x16xf32> -> vector<16x16xf32>
    %cst_108 = arith.constant 0.353553385 : f32
    %285 = vector.broadcast %cst_108 : f32 to vector<16x16xf32>
    %286 = arith.mulf %284, %285 : vector<16x16xf32>
    %287 = arith.addf %286, %124 : vector<16x16xf32>
    %cst_109 = arith.constant dense<0xFF800000> : vector<16xf32>
    %288 = vector.multi_reduction <maximumf>, %287, %cst_109 [1] : vector<16x16xf32> to vector<16xf32>
    %289 = vector.shape_cast %288 : vector<16xf32> to vector<16x1xf32>
    %290 = vector.broadcast %289 : vector<16x1xf32> to vector<16x16xf32>
    %291 = arith.subf %287, %290 : vector<16x16xf32>
    %292 = math.exp %291 : vector<16x16xf32>
    %cst_110 = arith.constant dense<0.000000e+00> : vector<16xf32>
    %293 = vector.multi_reduction <add>, %292, %cst_110 [1] : vector<16x16xf32> to vector<16xf32>
    %294 = vector.shape_cast %293 : vector<16xf32> to vector<16x1xf32>
    %295 = tpu.reciprocal %294 {approx = true} : vector<16x1xf32> -> vector<16x1xf32>
    %296 = vector.broadcast %295 : vector<16x1xf32> to vector<16x16xf32>
    %297 = arith.mulf %292, %296 : vector<16x16xf32>
    %cst_111 = arith.constant dense<0.000000e+00> : vector<16x8xf32>
    %298 = tpu.matmul %297, %283, %cst_111 {dimension_numbers = #tpu.dot_dimension_numbers<[1], [0], [0], [1], [0, 0, 1, 1], [], []>} : vector<16x16xf32>, vector<16x8xf32>, vector<16x8xf32> -> vector<16x8xf32>
    %299 = vector.extract_strided_slice %280 {offsets = [0, 8], sizes = [16, 8], strides = [1, 1]} : vector<16x96xf32> to vector<16x8xf32>
    %300 = vector.extract_strided_slice %280 {offsets = [0, 40], sizes = [16, 8], strides = [1, 1]} : vector<16x96xf32> to vector<16x8xf32>
    %301 = vector.extract_strided_slice %280 {offsets = [0, 72], sizes = [16, 8], strides = [1, 1]} : vector<16x96xf32> to vector<16x8xf32>
    %cst_112 = arith.constant dense<0.000000e+00> : vector<16x16xf32>
    %302 = tpu.matmul %299, %300, %cst_112 {dimension_numbers = #tpu.dot_dimension_numbers<[1], [1], [0], [0], [0, 0, 1, 0], [], []>} : vector<16x8xf32>, vector<16x8xf32>, vector<16x16xf32> -> vector<16x16xf32>
    %cst_113 = arith.constant 0.353553385 : f32
    %303 = vector.broadcast %cst_113 : f32 to vector<16x16xf32>
    %304 = arith.mulf %302, %303 : vector<16x16xf32>
    %305 = arith.addf %304, %124 : vector<16x16xf32>
    %cst_114 = arith.constant dense<0xFF800000> : vector<16xf32>
    %306 = vector.multi_reduction <maximumf>, %305, %cst_114 [1] : vector<16x16xf32> to vector<16xf32>
    %307 = vector.shape_cast %306 : vector<16xf32> to vector<16x1xf32>
    %308 = vector.broadcast %307 : vector<16x1xf32> to vector<16x16xf32>
    %309 = arith.subf %305, %308 : vector<16x16xf32>
    %310 = math.exp %309 : vector<16x16xf32>
    %cst_115 = arith.constant dense<0.000000e+00> : vector<16xf32>
    %311 = vector.multi_reduction <add>, %310, %cst_115 [1] : vector<16x16xf32> to vector<16xf32>
    %312 = vector.shape_cast %311 : vector<16xf32> to vector<16x1xf32>
    %313 = tpu.reciprocal %312 {approx = true} : vector<16x1xf32> -> vector<16x1xf32>
    %314 = vector.broadcast %313 : vector<16x1xf32> to vector<16x16xf32>
    %315 = arith.mulf %310, %314 : vector<16x16xf32>
    %cst_116 = arith.constant dense<0.000000e+00> : vector<16x8xf32>
    %316 = tpu.matmul %315, %301, %cst_116 {dimension_numbers = #tpu.dot_dimension_numbers<[1], [0], [0], [1], [0, 0, 1, 1], [], []>} : vector<16x16xf32>, vector<16x8xf32>, vector<16x8xf32> -> vector<16x8xf32>
    %317 = vector.extract_strided_slice %280 {offsets = [0, 16], sizes = [16, 8], strides = [1, 1]} : vector<16x96xf32> to vector<16x8xf32>
    %318 = vector.extract_strided_slice %280 {offsets = [0, 48], sizes = [16, 8], strides = [1, 1]} : vector<16x96xf32> to vector<16x8xf32>
    %319 = vector.extract_strided_slice %280 {offsets = [0, 80], sizes = [16, 8], strides = [1, 1]} : vector<16x96xf32> to vector<16x8xf32>
    %cst_117 = arith.constant dense<0.000000e+00> : vector<16x16xf32>
    %320 = tpu.matmul %317, %318, %cst_117 {dimension_numbers = #tpu.dot_dimension_numbers<[1], [1], [0], [0], [0, 0, 1, 0], [], []>} : vector<16x8xf32>, vector<16x8xf32>, vector<16x16xf32> -> vector<16x16xf32>
    %cst_118 = arith.constant 0.353553385 : f32
    %321 = vector.broadcast %cst_118 : f32 to vector<16x16xf32>
    %322 = arith.mulf %320, %321 : vector<16x16xf32>
    %323 = arith.addf %322, %124 : vector<16x16xf32>
    %cst_119 = arith.constant dense<0xFF800000> : vector<16xf32>
    %324 = vector.multi_reduction <maximumf>, %323, %cst_119 [1] : vector<16x16xf32> to vector<16xf32>
    %325 = vector.shape_cast %324 : vector<16xf32> to vector<16x1xf32>
    %326 = vector.broadcast %325 : vector<16x1xf32> to vector<16x16xf32>
    %327 = arith.subf %323, %326 : vector<16x16xf32>
    %328 = math.exp %327 : vector<16x16xf32>
    %cst_120 = arith.constant dense<0.000000e+00> : vector<16xf32>
    %329 = vector.multi_reduction <add>, %328, %cst_120 [1] : vector<16x16xf32> to vector<16xf32>
    %330 = vector.shape_cast %329 : vector<16xf32> to vector<16x1xf32>
    %331 = tpu.reciprocal %330 {approx = true} : vector<16x1xf32> -> vector<16x1xf32>
    %332 = vector.broadcast %331 : vector<16x1xf32> to vector<16x16xf32>
    %333 = arith.mulf %328, %332 : vector<16x16xf32>
    %cst_121 = arith.constant dense<0.000000e+00> : vector<16x8xf32>
    %334 = tpu.matmul %333, %319, %cst_121 {dimension_numbers = #tpu.dot_dimension_numbers<[1], [0], [0], [1], [0, 0, 1, 1], [], []>} : vector<16x16xf32>, vector<16x8xf32>, vector<16x8xf32> -> vector<16x8xf32>
    %335 = vector.extract_strided_slice %280 {offsets = [0, 24], sizes = [16, 8], strides = [1, 1]} : vector<16x96xf32> to vector<16x8xf32>
    %336 = vector.extract_strided_slice %280 {offsets = [0, 56], sizes = [16, 8], strides = [1, 1]} : vector<16x96xf32> to vector<16x8xf32>
    %337 = vector.extract_strided_slice %280 {offsets = [0, 88], sizes = [16, 8], strides = [1, 1]} : vector<16x96xf32> to vector<16x8xf32>
    %cst_122 = arith.constant dense<0.000000e+00> : vector<16x16xf32>
    %338 = tpu.matmul %335, %336, %cst_122 {dimension_numbers = #tpu.dot_dimension_numbers<[1], [1], [0], [0], [0, 0, 1, 0], [], []>} : vector<16x8xf32>, vector<16x8xf32>, vector<16x16xf32> -> vector<16x16xf32>
    %cst_123 = arith.constant 0.353553385 : f32
    %339 = vector.broadcast %cst_123 : f32 to vector<16x16xf32>
    %340 = arith.mulf %338, %339 : vector<16x16xf32>
    %341 = arith.addf %340, %124 : vector<16x16xf32>
    %cst_124 = arith.constant dense<0xFF800000> : vector<16xf32>
    %342 = vector.multi_reduction <maximumf>, %341, %cst_124 [1] : vector<16x16xf32> to vector<16xf32>
    %343 = vector.shape_cast %342 : vector<16xf32> to vector<16x1xf32>
    %344 = vector.broadcast %343 : vector<16x1xf32> to vector<16x16xf32>
    %345 = arith.subf %341, %344 : vector<16x16xf32>
    %346 = math.exp %345 : vector<16x16xf32>
    %cst_125 = arith.constant dense<0.000000e+00> : vector<16xf32>
    %347 = vector.multi_reduction <add>, %346, %cst_125 [1] : vector<16x16xf32> to vector<16xf32>
    %348 = vector.shape_cast %347 : vector<16xf32> to vector<16x1xf32>
    %349 = tpu.reciprocal %348 {approx = true} : vector<16x1xf32> -> vector<16x1xf32>
    %350 = vector.broadcast %349 : vector<16x1xf32> to vector<16x16xf32>
    %351 = arith.mulf %346, %350 : vector<16x16xf32>
    %cst_126 = arith.constant dense<0.000000e+00> : vector<16x8xf32>
    %352 = tpu.matmul %351, %337, %cst_126 {dimension_numbers = #tpu.dot_dimension_numbers<[1], [0], [0], [1], [0, 0, 1, 1], [], []>} : vector<16x16xf32>, vector<16x8xf32>, vector<16x8xf32> -> vector<16x8xf32>
    %353 = tpu.concatenate %298, %316, %334, %352 in 1 : vector<16x8xf32>, vector<16x8xf32>, vector<16x8xf32>, vector<16x8xf32> -> vector<16x32xf32>
    %c272 = arith.constant 272 : index
    %c0_127 = arith.constant 0 : index
    %354 = vector.load %arg7[%c272, %c0_127] : memref<376x32xf32, #tpu.memory_space<vmem>>, vector<32x32xf32>
    %cst_128 = arith.constant dense<0.000000e+00> : vector<16x32xf32>
    %355 = tpu.matmul %353, %354, %cst_128 {dimension_numbers = #tpu.dot_dimension_numbers<[1], [0], [0], [1], [0, 0, 1, 1], [], []>} : vector<16x32xf32>, vector<32x32xf32>, vector<16x32xf32> -> vector<16x32xf32>
    %c368 = arith.constant 368 : index
    %c0_129 = arith.constant 0 : index
    %356 = vector.load %arg7[%c368, %c0_129] : memref<376x32xf32, #tpu.memory_space<vmem>>, vector<1x32xf32>
    %357 = vector.broadcast %356 : vector<1x32xf32> to vector<16x32xf32>
    %358 = arith.addf %355, %357 : vector<16x32xf32>
    %359 = arith.addf %358, %275 : vector<16x32xf32>
    %c370 = arith.constant 370 : index
    %c0_130 = arith.constant 0 : index
    %360 = vector.load %arg7[%c370, %c0_130] : memref<376x32xf32, #tpu.memory_space<vmem>>, vector<1x32xf32>
    %c371 = arith.constant 371 : index
    %c0_131 = arith.constant 0 : index
    %361 = vector.load %arg7[%c371, %c0_131] : memref<376x32xf32, #tpu.memory_space<vmem>>, vector<1x32xf32>
    %cst_132 = arith.constant dense<0.000000e+00> : vector<16xf32>
    %362 = vector.multi_reduction <add>, %359, %cst_132 [1] : vector<16x32xf32> to vector<16xf32>
    %363 = vector.shape_cast %362 : vector<16xf32> to vector<16x1xf32>
    %cst_133 = arith.constant 3.200000e+01 : f32
    %364 = vector.broadcast %cst_133 : f32 to vector<16x1xf32>
    %365 = arith.divf %363, %364 : vector<16x1xf32>
    %366 = vector.broadcast %365 : vector<16x1xf32> to vector<16x32xf32>
    %367 = arith.subf %359, %366 : vector<16x32xf32>
    %368 = arith.mulf %367, %367 : vector<16x32xf32>
    %cst_134 = arith.constant dense<0.000000e+00> : vector<16xf32>
    %369 = vector.multi_reduction <add>, %368, %cst_134 [1] : vector<16x32xf32> to vector<16xf32>
    %370 = vector.shape_cast %369 : vector<16xf32> to vector<16x1xf32>
    %cst_135 = arith.constant 3.200000e+01 : f32
    %371 = vector.broadcast %cst_135 : f32 to vector<16x1xf32>
    %372 = arith.divf %370, %371 : vector<16x1xf32>
    %373 = vector.broadcast %365 : vector<16x1xf32> to vector<16x32xf32>
    %374 = arith.subf %359, %373 : vector<16x32xf32>
    %cst_136 = arith.constant 9.99999996E-13 : f32
    %375 = vector.broadcast %cst_136 : f32 to vector<16x1xf32>
    %376 = arith.addf %372, %375 : vector<16x1xf32>
    %377 = math.rsqrt %376 : vector<16x1xf32>
    %378 = vector.broadcast %377 : vector<16x1xf32> to vector<16x32xf32>
    %379 = arith.mulf %374, %378 : vector<16x32xf32>
    %380 = vector.broadcast %360 : vector<1x32xf32> to vector<16x32xf32>
    %381 = arith.mulf %379, %380 : vector<16x32xf32>
    %382 = vector.broadcast %361 : vector<1x32xf32> to vector<16x32xf32>
    %383 = arith.addf %381, %382 : vector<16x32xf32>
    %c40_137 = arith.constant 40 : index
    %c0_138 = arith.constant 0 : index
    %384 = vector.load %arg9[%c40_137, %c0_138] : memref<80x64xf32, #tpu.memory_space<vmem>>, vector<32x64xf32>
    %cst_139 = arith.constant dense<0.000000e+00> : vector<16x64xf32>
    %385 = tpu.matmul %383, %384, %cst_139 {dimension_numbers = #tpu.dot_dimension_numbers<[1], [0], [0], [1], [0, 0, 1, 1], [], []>} : vector<16x32xf32>, vector<32x64xf32>, vector<16x64xf32> -> vector<16x64xf32>
    %c72_140 = arith.constant 72 : index
    %c0_141 = arith.constant 0 : index
    %386 = vector.load %arg9[%c72_140, %c0_141] : memref<80x64xf32, #tpu.memory_space<vmem>>, vector<1x64xf32>
    %387 = vector.broadcast %386 : vector<1x64xf32> to vector<16x64xf32>
    %388 = arith.addf %385, %387 : vector<16x64xf32>
    %cst_142 = arith.constant 5.000000e-01 : f32
    %389 = vector.broadcast %cst_142 : f32 to vector<16x64xf32>
    %390 = arith.mulf %388, %389 : vector<16x64xf32>
    %cst_143 = arith.constant 0.707106769 : f32
    %391 = vector.broadcast %cst_143 : f32 to vector<16x64xf32>
    %392 = arith.mulf %388, %391 : vector<16x64xf32>
    %393 = math.erf %392 : vector<16x64xf32>
    %cst_144 = arith.constant 1.000000e+00 : f32
    %394 = vector.broadcast %cst_144 : f32 to vector<16x64xf32>
    %395 = arith.addf %394, %393 : vector<16x64xf32>
    %396 = arith.mulf %390, %395 : vector<16x64xf32>
    %c304 = arith.constant 304 : index
    %c0_145 = arith.constant 0 : index
    %397 = vector.load %arg7[%c304, %c0_145] : memref<376x32xf32, #tpu.memory_space<vmem>>, vector<64x32xf32>
    %cst_146 = arith.constant dense<0.000000e+00> : vector<16x32xf32>
    %398 = tpu.matmul %396, %397, %cst_146 {dimension_numbers = #tpu.dot_dimension_numbers<[1], [0], [0], [1], [0, 0, 1, 1], [], []>} : vector<16x64xf32>, vector<64x32xf32>, vector<16x32xf32> -> vector<16x32xf32>
    %c369 = arith.constant 369 : index
    %c0_147 = arith.constant 0 : index
    %399 = vector.load %arg7[%c369, %c0_147] : memref<376x32xf32, #tpu.memory_space<vmem>>, vector<1x32xf32>
    %400 = vector.broadcast %399 : vector<1x32xf32> to vector<16x32xf32>
    %401 = arith.addf %398, %400 : vector<16x32xf32>
    %402 = arith.addf %401, %383 : vector<16x32xf32>
    %c372 = arith.constant 372 : index
    %c0_148 = arith.constant 0 : index
    %403 = vector.load %arg7[%c372, %c0_148] : memref<376x32xf32, #tpu.memory_space<vmem>>, vector<1x32xf32>
    %c373 = arith.constant 373 : index
    %c0_149 = arith.constant 0 : index
    %404 = vector.load %arg7[%c373, %c0_149] : memref<376x32xf32, #tpu.memory_space<vmem>>, vector<1x32xf32>
    %cst_150 = arith.constant dense<0.000000e+00> : vector<16xf32>
    %405 = vector.multi_reduction <add>, %402, %cst_150 [1] : vector<16x32xf32> to vector<16xf32>
    %406 = vector.shape_cast %405 : vector<16xf32> to vector<16x1xf32>
    %cst_151 = arith.constant 3.200000e+01 : f32
    %407 = vector.broadcast %cst_151 : f32 to vector<16x1xf32>
    %408 = arith.divf %406, %407 : vector<16x1xf32>
    %409 = vector.broadcast %408 : vector<16x1xf32> to vector<16x32xf32>
    %410 = arith.subf %402, %409 : vector<16x32xf32>
    %411 = arith.mulf %410, %410 : vector<16x32xf32>
    %cst_152 = arith.constant dense<0.000000e+00> : vector<16xf32>
    %412 = vector.multi_reduction <add>, %411, %cst_152 [1] : vector<16x32xf32> to vector<16xf32>
    %413 = vector.shape_cast %412 : vector<16xf32> to vector<16x1xf32>
    %cst_153 = arith.constant 3.200000e+01 : f32
    %414 = vector.broadcast %cst_153 : f32 to vector<16x1xf32>
    %415 = arith.divf %413, %414 : vector<16x1xf32>
    %416 = vector.broadcast %408 : vector<16x1xf32> to vector<16x32xf32>
    %417 = arith.subf %402, %416 : vector<16x32xf32>
    %cst_154 = arith.constant 9.99999996E-13 : f32
    %418 = vector.broadcast %cst_154 : f32 to vector<16x1xf32>
    %419 = arith.addf %415, %418 : vector<16x1xf32>
    %420 = math.rsqrt %419 : vector<16x1xf32>
    %421 = vector.broadcast %420 : vector<16x1xf32> to vector<16x32xf32>
    %422 = arith.mulf %417, %421 : vector<16x32xf32>
    %423 = vector.broadcast %403 : vector<1x32xf32> to vector<16x32xf32>
    %424 = arith.mulf %422, %423 : vector<16x32xf32>
    %425 = vector.broadcast %404 : vector<1x32xf32> to vector<16x32xf32>
    %426 = arith.addf %424, %425 : vector<16x32xf32>
    %c0_155 = arith.constant 0 : index
    %c0_156 = arith.constant 0 : index
    %427 = vector.load %arg6[%c0_155, %c0_156] : memref<2x16xf32, #tpu.memory_space<vmem>>, vector<2x16xf32>
    %cst_157 = arith.constant dense<0.000000e+00> : vector<2x32xf32>
    %428 = tpu.matmul %427, %426, %cst_157 {dimension_numbers = #tpu.dot_dimension_numbers<[1], [0], [0], [1], [0, 0, 1, 1], [], []>} : vector<2x16xf32>, vector<16x32xf32>, vector<2x32xf32> -> vector<2x32xf32>
    %429 = arith.addf %62, %428 : vector<2x32xf32>
    %c160 = arith.constant 160 : index
    %c0_158 = arith.constant 0 : index
    %430 = vector.load %arg7[%c160, %c0_158] : memref<376x32xf32, #tpu.memory_space<vmem>>, vector<1x32xf32>
    %c161 = arith.constant 161 : index
    %c0_159 = arith.constant 0 : index
    %431 = vector.load %arg7[%c161, %c0_159] : memref<376x32xf32, #tpu.memory_space<vmem>>, vector<1x32xf32>
    %cst_160 = arith.constant dense<0.000000e+00> : vector<2xf32>
    %432 = vector.multi_reduction <add>, %429, %cst_160 [1] : vector<2x32xf32> to vector<2xf32>
    %433 = vector.shape_cast %432 : vector<2xf32> to vector<2x1xf32>
    %cst_161 = arith.constant 3.200000e+01 : f32
    %434 = vector.broadcast %cst_161 : f32 to vector<2x1xf32>
    %435 = arith.divf %433, %434 : vector<2x1xf32>
    %436 = vector.broadcast %435 : vector<2x1xf32> to vector<2x32xf32>
    %437 = arith.subf %429, %436 : vector<2x32xf32>
    %438 = arith.mulf %437, %437 : vector<2x32xf32>
    %cst_162 = arith.constant dense<0.000000e+00> : vector<2xf32>
    %439 = vector.multi_reduction <add>, %438, %cst_162 [1] : vector<2x32xf32> to vector<2xf32>
    %440 = vector.shape_cast %439 : vector<2xf32> to vector<2x1xf32>
    %cst_163 = arith.constant 3.200000e+01 : f32
    %441 = vector.broadcast %cst_163 : f32 to vector<2x1xf32>
    %442 = arith.divf %440, %441 : vector<2x1xf32>
    %443 = vector.broadcast %435 : vector<2x1xf32> to vector<2x32xf32>
    %444 = arith.subf %429, %443 : vector<2x32xf32>
    %cst_164 = arith.constant 9.99999996E-13 : f32
    %445 = vector.broadcast %cst_164 : f32 to vector<2x1xf32>
    %446 = arith.addf %442, %445 : vector<2x1xf32>
    %447 = math.rsqrt %446 : vector<2x1xf32>
    %448 = vector.broadcast %447 : vector<2x1xf32> to vector<2x32xf32>
    %449 = arith.mulf %444, %448 : vector<2x32xf32>
    %450 = vector.broadcast %430 : vector<1x32xf32> to vector<2x32xf32>
    %451 = arith.mulf %449, %450 : vector<2x32xf32>
    %452 = vector.broadcast %431 : vector<1x32xf32> to vector<2x32xf32>
    %453 = arith.addf %451, %452 : vector<2x32xf32>
    %c0_165 = arith.constant 0 : index
    %c0_166 = arith.constant 0 : index
    %454 = vector.load %arg10[%c0_165, %c0_166] : memref<2x32xf32, #tpu.memory_space<vmem>>, vector<2x32xf32>
    tpu.vector_store %arg10[%c0_165, %c0_166], %453 {strides = array<i32>} : memref<2x32xf32, #tpu.memory_space<vmem>>, vector<2x32xf32>,
    return
  }
}

</mosaic_0001>

<bundles_post_ra>
// kernel: tpu_custom_call.1
= control target key start
LH: loop header
LB: loop body
LE: loop exit
PB: predicated region body
PF: predicated region fallthrough
CT: control target
= control target key end

     0   :  { %v4187_v3 = vmov 0.0   ;;  %v4188_v4 = vmov 0.0|0.0   ;;  %vm158_vm0 = vcmask 64512   ;;  %vm4189_vm1 = vmmov 0   ;;  %s4902_s0 = inlined_call_operand.vmem [shape: f32[2,64], index: 0, kind: input, shape index: {}]   ;;  %s4903_s1 = inlined_call_operand.vmem [shape: f32[2,8], index: 1, kind: input, shape index: {}]   ;;  %s4904_s2 = inlined_call_operand.vmem [shape: f32[16,64], index: 2, kind: input, shape index: {}]   ;;  %s4905_s3 = inlined_call_operand.vmem [shape: f32[16,8], index: 3, kind: input, shape index: {}]   ;;  %s4906_s4 = inlined_call_operand.vmem [shape: f32[2,32], index: 4, kind: input, shape index: {}]   ;;  %s4907_s5 = inlined_call_operand.vmem [shape: f32[16,16], index: 5, kind: input, shape index: {}]   ;;  %s4908_s6 = inlined_call_operand.vmem [shape: f32[2,16], index: 6, kind: input, shape index: {}]   ;;  %s4909_s7 = inlined_call_operand.vmem [shape: f32[376,32], index: 7, kind: input, shape index: {}]   ;;  %s4910_s8 = inlined_call_operand.vmem [shape: f32[80,96], index: 8, kind: input, shape index: {}]   ;;  %s4911_s9 = inlined_call_operand.vmem [shape: f32[80,64], index: 9, kind: input, shape index: {}]   ;;  %s4912_s10 = inlined_call_operand.hbm [shape: f32[2,32], index: 10, kind: output, shape index: {}]  }
   0x1   :  { %v152_v0 = vld [vmem:[%s4909_s7 + $0x40] sm:$0xff]  ;;  %v38_v2 = vld [vmem:[%s4909_s7 + $0x8] sm:$0xff]  ;;  %3518 = vmatprep.subr.mxu1 %v4187_v3  ;;  %3770 = vmatprep.subr.bf16.mxu0 %v4188_v4  ;;  %v263_v8 = vld [vmem:[%s4909_s7 + $0x50] sm:$0xff]  ;;  %vm50_vm2 = vcmask 523264  }
   0x2   :  { %v37_v1 = vld [vmem:[%s4909_s7] sm:$0xff]  ;;  %v262_v7 = vld [vmem:[%s4909_s7 + $0x48] sm:$0xff]  ;;  %3519 = vmatpush3.msra.mxu1 %v152_v0  ;;  %3520 = vmatprep.mubr.msk.f32.mxu1 %vm4189_vm1, %v4187_v3  ;;  %v39_v10 = vld [vmem:[%s4909_s7 + $0x10] sm:$0xff] }
   0x3   :  { %v3771_v5 = vpack.c.bf16 %v38_v2, %v37_v1  ;;  %v151_v6 = vld [vmem:[%s4903_s1] sm:$0x3]  ;;  %v3782_v9 = vpack.c.bf16 %v263_v8, %v262_v7  ;;  %v40_v11 = vld [vmem:[%s4909_s7 + $0x18] sm:$0xff]  ;;  %v42_v17 = vld [vmem:[%s4909_s7 + $0x28] sm:$0xff]  ;;  %3515 = vmatprep.mubr.msk.f32.mxu0 %vm4189_vm1, %v4187_v3 }
   0x4   :  { %v264_v12 = vld [vmem:[%s4909_s7 + $0x58] sm:$0xff]  ;;  %3521 = vmatmul.mubr.msk.f32.vlgmr.msra.gmra.mrb[0].mxu1 %vm158_vm0, %v151_v6  ;;  %v3774_v13 = vpack.c.bf16 %v40_v11, %v39_v10  ;;  %v265_v14 = vld [vmem:[%s4909_s7 + $0x60] sm:$0xff]  ;;  %v266_v18 = vld [vmem:[%s4909_s7 + $0x68] sm:$0xff] }
   0x5   :  { %3772 = vmatpush3.bf16.msra.mxu0 %v3771_v5  ;;  %v41_v15 = vld [vmem:[%s4909_s7 + $0x20] sm:$0xff]  ;;  %3783 = vmatprep.subr.bf16.mxu1 %v3782_v9  ;;  %v3786_v16 = vpack.c.bf16 %v265_v14, %v264_v12  ;;  %v267_v19 = vld [vmem:[%s4909_s7 + $0x70] sm:$0xff]  ;;  %v268_v23 = vld [vmem:[%s4909_s7 + $0x78] sm:$0xff] }
   0x6   :  { %3773 = vmatprep.subr.bf16.mxu0 %v4188_v4  ;;  %3785 = vmatpush3.bf16.msra.mxu1 %v3782_v9  ;;  %v3790_v20 = vpack.c.bf16 %v267_v19, %v266_v18  ;;  %v260_v21 = vld [vmem:[%s4904_s2] sm:$0xff]  ;;  %v3777_v22 = vpack.c.bf16 %v42_v17, %v41_v15  ;;  %v43_v25 = vld [vmem:[%s4909_s7 + $0x30] sm:$0xff]  ;;  %v44_v26 = vld [vmem:[%s4909_s7 + $0x38] sm:$0xff] }
   0x7   :  { %3787 = vmatprep.subr.bf16.mxu1 %v3786_v16  ;;  %v269_v24 = vld [vmem:[%s4909_s7 + $0x80] sm:$0xff]  ;;  %3539 = vmatprep.mubr.msk.f32.mxu1 %vm50_vm2, %v260_v21 }
   0x9   :  { %3775 = vmatpush3.bf16.msra.mxu0 %v3774_v13 }
   0xa   :  { %3776 = vmatprep.subr.bf16.mxu0 %v4188_v4 }
   0xb   :  { %15 = vsyncpa [#allocation3], 0  ;;  %3789 = vmatpush3.bf16.msra.mxu1 %v3786_v16  ;;  %v3794_v27 = vpack.c.bf16 %v269_v24, %v268_v23  ;;  %v3780_v28 = vpack.c.bf16 %v44_v26, %v43_v25  ;;  %v399_v29 = vld [vmem:[%s4909_s7 + $0x88] sm:$0xff]  ;;  %v36_v30 = vld [vmem:[%s4902_s0] sm:$0x3]  ;;  %vm358_vm3 = vcmask 261120  }
   0xc   :  { %3791 = vmatprep.subr.bf16.mxu1 %v3790_v20  ;;  %v397_v31 = vld [vmem:[%s4905_s3] sm:$0xff]  ;;  %v261_v32 = vld [vmem:[%s4904_s2 + $0x8] sm:$0xff]  ;;  %v3259_v37 = vld [vmem:[%s4909_s7 + $0x92] ss:$0 sm:$0xff]  ;;  %s4190_s17 = smov 96   ;;  %s4191_s18 = smov 88  }
   0xd   :  { %3778 = vmatpush3.bf16.msra.mxu0 %v3777_v22  ;;  %v398_v33 = vld [vmem:[%s4905_s3 + $0x8] sm:$0xff]  ;;  %v3264_v40 = vld [vmem:[%s4909_s7 + $0x93] ss:$0 sm:$0xff]  ;;  %v530_v10 = vld [vmem:[%s4910_s8] sm:$0xff]  ;;  %s4192_s0 = smov 120   ;;  %vm713_vm5 = vcmask 130048  }
   0xe   :  { %3779 = vmatprep.subr.bf16.mxu0 %v4188_v4  ;;  %v531_v11 = vld [vmem:[%s4910_s8 + $0x8] sm:$0xff]  ;;  %v532_v13 = vld [vmem:[%s4910_s8 + $0x10] sm:$0xff]  ;;  %v533_v14 = vld [vmem:[%s4910_s8 + $0x18] sm:$0xff]  ;;  %s4193_s21 = smov 64   ;;  %s4194_s22 = smov 56   ;;  %vm1463_vm6 = vcmask 195584  }
   0xf   :  { %3793 = vmatpush3.bf16.msra.mxu1 %v3790_v20  ;;  %v3798_v12 = vpack.c.bf16 %v531_v11, %v530_v10  ;;  %v3802_v15 = vpack.c.bf16 %v533_v14, %v532_v13  ;;  %vm4420_vm4 = vmpackc.low %vm158_vm0, %vm158_vm0  ;;  %s4195_s23 = smov 112   ;;  %s4196_s24 = smov 80   ;;  %vm126_vm7 = vcmask 254976  }
  0x10   :  { %3795 = vmatprep.subr.bf16.mxu1 %v3794_v27  ;;  %s4197_s25 = smov 48   ;;  %s4198_s26 = smov 104  }
  0x11   :  { %3781 = vmatpush3.bf16.msra.mxu0 %v3780_v28  ;;  %s4199_s1 = smov 72   ;;  %s4200_s27 = smov 40  }
  0x12   :  { %3542 = vmatprep.subr.mxu0 %v399_v29  ;;  %s4201_s28 = smov 8   ;;  %s4202_s29 = smov 16  }
  0x13   :  { %3797 = vmatpush3.bf16.msra.mxu1 %v3794_v27  ;;  %s4203_s19 = smov 24  }
  0x14   :  { %3516 = vmatmul.mubr.msk.f32.vlgmr.msra.gmra.mrb[0].mxu0 %vm50_vm2, %v36_v30  ;;  %3799 = vmatprep.subr.bf16.mxu1 %v3798_v12  ;;  %v3262_v30 = vld [vmem:[%s4909_s7 + $0x9c] ss:$0 sm:$0xff] }
  0x15   :  { %3543 = vmatpush3.msra.mxu0 %v399_v29  ;;  %3544 = vmatprep.mubr.msk.f32.mxu0 %vm158_vm0, %v397_v31 }
  0x16   :  { %3540 = vmatmul.mubr.msk.f32.vlgmr.msra.gmra.mrb[2].mxu1 %vm50_vm2, %v261_v32  ;;  %v3267_v32 = vld [vmem:[%s4909_s7 + $0x9e] ss:$0 sm:$0xff] }
  0x17   :  { %3801 = vmatpush3.bf16.msra.mxu1 %v3798_v12 }
  0x18   :  { %3545 = vmatmul.mubr.msk.f32.vlgmr.msra.gmra.mrb[2].mxu0 %vm158_vm0, %v398_v33  ;;  %3803 = vmatprep.subr.bf16.mxu1 %v3802_v15 }
  0x1b   :  { %3805 = vmatpush3.bf16.msra.mxu1 %v3802_v15 }
  0xd7   :  { %v4347_v34 = vpop.f32.mrb[0].mxu1 }
  0xd8   :  { %v3522_v35 = vpop.f32.mrb[1].mxu1 }
  0xe7   :  { %v4349_v36 = vpop.f32.mrb[0].mxu0 }
  0xe8   :  { %v3517_v38 = vpop.f32.mrb[1].mxu0 }
  0xe9   :  { %v3541_v39 = vpop.f32.mrb[2].mxu1 }
  0xea   :  { %v353_v41 = vadd.f32 %v3541_v39, %v3259_v37  ;;  %v347_v42 = vpop.f32.mrb[3].mxu1  ;;  %v3263_v39 = vld [vmem:[%s4909_s7 + $0x9d] ss:$0 sm:$0xff] }
  0xeb   :  { %v348_v43 = vadd.f32 %v3259_v37, %v347_v42  ;;  %v3546_v44 = vpop.f32.mrb[2].mxu0 }
  0xec   :  { %v483_v45 = vadd.f32 %v3546_v44, %v3264_v40  ;;  %v362_v46 = vsel %vm358_vm3, %v353_v41, 0.0  ;;  %v477_v47 = vpop.f32.mrb[3].mxu0 }
  0xed   :  { %363 = vadd.xlane.f32.xlu1 %v362_v46  ;;  %v478_v48 = vadd.f32 %v3264_v40, %v477_v47  ;;  %v359_v49 = vsel %vm358_vm3, %v348_v43, 0.0  ;;  %v3268_v40 = vld [vmem:[%s4909_s7 + $0x9f] ss:$0 sm:$0xff] }
  0xee   :  { %360 = vadd.xlane.f32.xlu0 %v359_v49  ;;  %v491_v50 = vsel %vm358_vm3, %v483_v45, 0.0 }
  0xef   :  { %v488_v51 = vsel %vm358_vm3, %v478_v48, 0.0 }
  0xf1   :  { %492 = vadd.xlane.f32.xlu1 %v491_v50 }
  0xf2   :  { %489 = vadd.xlane.f32.xlu0 %v488_v51 }
 0x17a   :  { %v364_v52 = vpop.xlane.xlu1 %363 }
 0x17b   :  { %v366_v53 = vmul.f32 0.03125, %v364_v52  ;;  %v361_v54 = vpop.xlane.xlu0 %360  ;;  %v3269_v52 = vld [vmem:[%s4910_s8 + $0x20] ss:$0 sm:$0xff] }
 0x17c   :  { %v365_v55 = vmul.f32 0.03125, %v361_v54 }
 0x17d   :  { %v368_v56 = vsub.f32 %v353_v41, %v366_v53 }
 0x17e   :  { %v367_v57 = vsub.f32 %v348_v43, %v365_v55  ;;  %v493_v58 = vpop.xlane.xlu1 %492 }
 0x17f   :  { %v495_v59 = vmul.f32 0.03125, %v493_v58  ;;  %v490_v60 = vpop.xlane.xlu0 %489  ;;  %v370_v2 = vmul.f32 %v368_v56, %v368_v56 }
 0x180   :  { %v494_v61 = vmul.f32 0.03125, %v490_v60  ;;  %v369_v62 = vmul.f32 %v367_v57, %v367_v57 }
 0x181   :  { %v497_v63 = vsub.f32 %v483_v45, %v495_v59  ;;  %v374_v6 = vsel %vm358_vm3, %v370_v2, 0.0 }
 0x182   :  { %v496_v0 = vsub.f32 %v478_v48, %v494_v61  ;;  %v371_v1 = vsel %vm358_vm3, %v369_v62, 0.0 }
 0x183   :  { %372 = vadd.xlane.f32.xlu0 %v371_v1  ;;  %v499_v8 = vmul.f32 %v497_v63, %v497_v63  ;;  %v4433_v1 = vld [vmem:[%s4907_s5] sm:$0xff] }
 0x184   :  { %v498_v5 = vmul.f32 %v496_v0, %v496_v0 }
 0x185   :  { %v503_v9 = vsel %vm358_vm3, %v499_v8, 0.0 }
 0x186   :  { %v500_v7 = vsel %vm358_vm3, %v498_v5, 0.0 }
 0x187   :  { %375 = vadd.xlane.f32.xlu0 %v374_v6  ;;  %501 = vadd.xlane.f32.xlu1 %v500_v7  ;;  %v4438_v6 = vld [vmem:[%s4907_s5 + $0x8] sm:$0xff] }
 0x18b   :  { %504 = vadd.xlane.f32.xlu1 %v503_v9 }
 0x210   :  { %v373_v16 = vpop.xlane.xlu0 %372 }
 0x211   :  { %v377_v17 = vmul.f32 0.03125, %v373_v16 }
 0x213   :  { %v379_v18 = vadd.f32 1e-12, %v377_v17 }
 0x214   :  { %v502_v19 = vpop.xlane.xlu1 %501  ;;  %v376_v20 = vpop.xlane.xlu0 %375 }
 0x215   :  { %4059 = vrsqrt.f32 %v379_v18  ;;  %v506_v21 = vmul.f32 0.03125, %v502_v19  ;;  %v378_v22 = vmul.f32 0.03125, %v376_v20 }
 0x217   :  { %v508_v23 = vadd.f32 1e-12, %v506_v21  ;;  %v380_v24 = vadd.f32 1e-12, %v378_v22 }
 0x218   :  { %v505_v25 = vpop.xlane.xlu1 %504 }
 0x219   :  { %4061 = vrsqrt.f32 %v508_v23  ;;  %v507_v26 = vmul.f32 0.03125, %v505_v25 }
 0x21a   :  { %4063 = vrsqrt.f32 %v380_v24 }
 0x21b   :  { %v509_v27 = vadd.f32 1e-12, %v507_v26 }
 0x21d   :  { %4065 = vrsqrt.f32 %v509_v27 }
 0x21f   :  { %v4060_v28 = vpop.eup %4059 }
 0x220   :  { %v383_v29 = vmul.f32 %v4060_v28, %v367_v57 }
 0x222   :  { %v389_v37 = vmul.f32 %v3262_v30, %v383_v29 }
 0x223   :  { %v4062_v31 = vpop.eup %4061 }
 0x224   :  { %v4064_v33 = vpop.eup %4063  ;;  %v512_v35 = vmul.f32 %v4062_v31, %v496_v0  ;;  %v395_v45 = vadd.f32 %v3263_v39, %v389_v37 }
 0x225   :  { %v384_v38 = vmul.f32 %v4064_v33, %v368_v56 }
 0x226   :  { %v518_v41 = vmul.f32 %v3267_v32, %v512_v35 }
 0x227   :  { %v4066_v42 = vpop.eup %4065  ;;  %v390_v44 = vmul.f32 %v3262_v30, %v384_v38 }
 0x228   :  { %v513_v43 = vmul.f32 %v4066_v42, %v497_v63  ;;  %v524_v46 = vadd.f32 %v3268_v40, %v518_v41 }
 0x229   :  { %v396_v49 = vadd.f32 %v3263_v39, %v390_v44 }
 0x22a   :  { %v519_v47 = vmul.f32 %v3267_v32, %v513_v43  ;;  %v4389_v48 = vadd.f32 %v524_v46, %v395_v45 }
 0x22c   :  { %v525_v50 = vadd.f32 %v3268_v40, %v519_v47  ;;  %3555 = vmatprep.mubr.msk.f32.mxu1 %vm358_vm3, %v4389_v48 }
 0x22e   :  { %v4393_v51 = vadd.f32 %v525_v50, %v396_v49 }
 0x230   :  { %3556 = vmatmul.mubr.msk.f32.vlgmr.msra.gmra.mrb[4].mxu1 %vm358_vm3, %v4393_v51 }
 0x303   :  { %v3557_v53 = vpop.f32.mrb[4].mxu1 }
 0x304   :  { %v4400_v54 = vadd.f32 %v3557_v53, %v3269_v52  ;;  %v611_v55 = vpop.f32.mrb[5].mxu1 }
 0x305   :  { %v4402_v56 = vadd.f32 %v3269_v52, %v611_v55 }
 0x307   :  { %3562 = vmatprep.mubr.msk.f32.mxu0 %vm158_vm0, %v4402_v56  ;;  %v4408_v57 = vpack.i.bf16 %v4400_v54, %v4402_v56 }
 0x309   :  { %3980 = vrot.lane.b32.xlu0 %v4408_v57, %s4190_s17 }
 0x30d   :  { %3990 = vrot.lane.b32.xlu0 %v4408_v57, %s4191_s18 }
 0x311   :  { %823 = vrot.lane.b32.xlu0 %v4402_v56, %s4192_s0 }
 0x315   :  { %825 = vrot.lane.b32.xlu0 %v4400_v54, %s4192_s0 }
 0x37b   :  { %v3981_v58 = vpop.permute.xlu0 %3980 }
 0x37c   :  { %v3983_v59 = vunpack.i.h.bf16 %v3981_v58  ;;  %v3982_v60 = vunpack.i.l.bf16 %v3981_v58 }
 0x37e   :  { %v3806_v62 = vpack.c.bf16 %v3983_v59, %v3982_v60 }
 0x37f   :  { %v3991_v23 = vpop.permute.xlu0 %3990 }
 0x380   :  { %3808 = vmatprep.subr.msk.bf16.mxu0 %vm4420_vm4, %v3806_v62  ;;  %v3993_v25 = vunpack.i.h.bf16 %v3991_v23  ;;  %v3992_v26 = vunpack.i.l.bf16 %v3991_v23 }
 0x381   :  { %3811 = vmatpush3.bf16.xpose.msk.msra.mxu0 %vm4420_vm4, %v3806_v62 }
 0x382   :  { %v3816_v30 = vpack.c.bf16 %v3993_v25, %v3992_v26 }
 0x383   :  { %v824_v37 = vpop.permute.xlu0 %823 }
 0x387   :  { %v826_v38 = vpop.permute.xlu0 %825 }
 0x388   :  { %3563 = vmatmul.mubr.msk.f32.vlgmr.msra.gmra.mrb[4].mxu0 %vm158_vm0, %v4400_v54 }
 0x45b   :  { %v3564_v63 = vpop.f32.mrb[4].mxu0 }
 0x45c   :  { %v700_v0 = vpop.f32.mrb[5].mxu0  ;;  %v710_v2 = vmul.f32 0.35355338, %v3564_v63 }
 0x45d   :  { %v709_v5 = vmul.f32 0.35355338, %v700_v0 }
 0x45e   :  { %v712_v9 = vadd.f32 %v710_v2, %v4438_v6 }
 0x45f   :  { %v711_v7 = vadd.f32 %v709_v5, %v4433_v1 }
 0x460   :  { %v717_v10 = vsel %vm713_vm5, %v712_v9, -inf }
 0x461   :  { %v714_v8 = vsel %vm713_vm5, %v711_v7, -inf }
 0x462   :  { %715 = vmax.xlane.f32.xlu1 %v714_v8 }
 0x466   :  { %718 = vmax.xlane.f32.xlu1 %v717_v10 }
 0x4ef   :  { %v716_v11 = vpop.xlane.xlu1 %715 }
 0x4f0   :  { %v720_v12 = vsub.f32 %v711_v7, %v716_v11 }
 0x4f2   :  { %v722_v15 = vmul.f32 1.442695, %v720_v12 }
 0x4f3   :  { %v719_v13 = vpop.xlane.xlu1 %718 }
 0x4f4   :  { %v721_v14 = vsub.f32 %v712_v9, %v719_v13 }
 0x4f6   :  { %v724_v16 = vmul.f32 1.442695, %v721_v14 }
 0x4f8   :  { %4067 = vpow2.f32 %v724_v16 }
 0x4f9   :  { %4069 = vpow2.f32 %v722_v15 }
 0x502   :  { %v4068_v17 = vpop.eup %4067 }
 0x503   :  { %v729_v18 = vsel %vm713_vm5, %v4068_v17, 0.0  ;;  %v4070_v19 = vpop.eup %4069 }
 0x504   :  { %730 = vadd.xlane.f32.xlu1 %v729_v18  ;;  %v726_v20 = vsel %vm713_vm5, %v4070_v19, 0.0 }
 0x508   :  { %727 = vadd.xlane.f32.xlu1 %v726_v20 }
 0x519   :  { %3985 = vrot.lane.b32.xlu1 %v4408_v57, %s4193_s21 }
 0x591   :  { %v731_v21 = vpop.xlane.xlu1 %730 }
 0x592   :  { %4071 = vrcp.f32 %v731_v21 }
 0x595   :  { %v728_v22 = vpop.xlane.xlu1 %727 }
 0x596   :  { %4073 = vrcp.f32 %v728_v22 }
 0x599   :  { %v3986_v24 = vpop.permute.xlu1 %3985 }
 0x59a   :  { %v3988_v27 = vunpack.i.h.bf16 %v3986_v24  ;;  %v3987_v28 = vunpack.i.l.bf16 %v3986_v24 }
 0x59c   :  { %v3812_v29 = vpack.c.bf16 %v3988_v27, %v3987_v28  ;;  %v4072_v31 = vpop.eup %4071 }
 0x59d   :  { %v735_v35 = vmul.f32 %v4072_v31, %v4068_v17 }
 0x59e   :  { %3813 = vmatprep.subr.bf16.mxu0 %v3812_v29 }
 0x59f   :  { %3815 = vmatpush3.bf16.msra.mxu0 %v3812_v29 }
 0x5a0   :  { %v4074_v32 = vpop.eup %4073  ;;  %3818 = vmatprep.subr.msk.bf16.mxu0 %vm4420_vm4, %v3816_v30 }
 0x5a1   :  { %v734_v33 = vmul.f32 %v4074_v32, %v4070_v19 }
 0x5a3   :  { %3569 = vmatprep.mubr.msk.f32.mxu0 %vm713_vm5, %v734_v33 }
 0x5a4   :  { %3570 = vmatmul.mubr.msk.f32.vlgmr.msra.gmra.mrb[6].mxu0 %vm713_vm5, %v735_v35 }
 0x5a5   :  { %3576 = vmatprep.mubr.msk.f32.mxu0 %vm158_vm0, %v824_v37 }
 0x5a8   :  { %3821 = vmatpush3.bf16.xpose.msk.msra.mxu0 %vm4420_vm4, %v3816_v30 }
 0x5af   :  { %3577 = vmatmul.mubr.msk.f32.vlgmr.msra.gmra.mrb[8].mxu0 %vm158_vm0, %v826_v38 }
 0x677   :  { %v4456_v39 = vpop.f32.mrb[6].mxu0 }
 0x678   :  { %v4458_v40 = vpop.f32.mrb[7].mxu0 }
 0x682   :  { %v3578_v41 = vpop.f32.mrb[8].mxu0 }
 0x683   :  { %v915_v42 = vmul.f32 0.35355338, %v3578_v41  ;;  %v905_v43 = vpop.f32.mrb[9].mxu0 }
 0x684   :  { %v914_v44 = vmul.f32 0.35355338, %v905_v43 }
 0x685   :  { %v917_v45 = vadd.f32 %v915_v42, %v4438_v6 }
 0x686   :  { %v916_v46 = vadd.f32 %v914_v44, %v4433_v1 }
 0x687   :  { %v921_v47 = vsel %vm713_vm5, %v917_v45, -inf }
 0x688   :  { %922 = vmax.xlane.f32.xlu0 %v921_v47  ;;  %v918_v49 = vsel %vm713_vm5, %v916_v46, -inf }
 0x689   :  { %919 = vmax.xlane.f32.xlu1 %v918_v49 }
 0x69a   :  { %3995 = vrot.lane.b32.xlu1 %v4408_v57, %s4194_s22 }
 0x69e   :  { %1027 = vrot.lane.b32.xlu1 %v4402_v56, %s4195_s23 }
 0x6a2   :  { %1029 = vrot.lane.b32.xlu1 %v4400_v54, %s4195_s23 }
 0x715   :  { %v923_v50 = vpop.xlane.xlu0 %922 }
 0x716   :  { %v925_v52 = vsub.f32 %v917_v45, %v923_v50  ;;  %v920_v53 = vpop.xlane.xlu1 %919 }
 0x717   :  { %v924_v55 = vsub.f32 %v916_v46, %v920_v53 }
 0x718   :  { %v928_v58 = vmul.f32 1.442695, %v925_v52 }
 0x719   :  { %v926_v59 = vmul.f32 1.442695, %v924_v55 }
 0x71a   :  { %4075 = vpow2.f32 %v928_v58  ;;  %v3996_v60 = vpop.permute.xlu1 %3995 }
 0x71b   :  { %v3998_v62 = vunpack.i.h.bf16 %v3996_v60  ;;  %v3997_v63 = vunpack.i.l.bf16 %v3996_v60  ;;  %4077 = vpow2.f32 %v926_v59 }
 0x71d   :  { %v3822_v0 = vpack.c.bf16 %v3998_v62, %v3997_v63 }
 0x71e   :  { %v1028_v19 = vpop.permute.xlu1 %1027 }
 0x71f   :  { %3823 = vmatprep.subr.bf16.mxu1 %v3822_v0 }
 0x720   :  { %3825 = vmatpush3.bf16.msra.mxu1 %v3822_v0 }
 0x722   :  { %v1030_v20 = vpop.permute.xlu1 %1029 }
 0x724   :  { %v4076_v2 = vpop.eup %4075 }
 0x725   :  { %v933_v5 = vsel %vm713_vm5, %v4076_v2, 0.0  ;;  %v4078_v7 = vpop.eup %4077 }
 0x726   :  { %934 = vadd.xlane.f32.xlu0 %v933_v5  ;;  %v930_v8 = vsel %vm713_vm5, %v4078_v7, 0.0 }
 0x72a   :  { %931 = vadd.xlane.f32.xlu0 %v930_v8 }
 0x740   :  { %4000 = vrot.lane.b32.xlu0 %v4408_v57, %s4196_s24 }
 0x7b3   :  { %v935_v9 = vpop.xlane.xlu0 %934 }
 0x7b4   :  { %4079 = vrcp.f32 %v935_v9 }
 0x7b7   :  { %v932_v10 = vpop.xlane.xlu0 %931 }
 0x7b8   :  { %4081 = vrcp.f32 %v932_v10 }
 0x7bb   :  { %v4001_v11 = vpop.permute.xlu0 %4000 }
 0x7bc   :  { %v4003_v12 = vunpack.i.h.bf16 %v4001_v11  ;;  %v4002_v13 = vunpack.i.l.bf16 %v4001_v11 }
 0x7be   :  { %v3826_v14 = vpack.c.bf16 %v4003_v12, %v4002_v13  ;;  %v4080_v15 = vpop.eup %4079 }
 0x7bf   :  { %v939_v18 = vmul.f32 %v4080_v15, %v4076_v2 }
 0x7c0   :  { %3828 = vmatprep.subr.msk.bf16.mxu1 %vm4420_vm4, %v3826_v14 }
 0x7c2   :  { %v4082_v16 = vpop.eup %4081 }
 0x7c3   :  { %v938_v17 = vmul.f32 %v4082_v16, %v4078_v7 }
 0x7c5   :  { %3583 = vmatprep.mubr.msk.f32.mxu1 %vm713_vm5, %v938_v17 }
 0x7c6   :  { %3584 = vmatmul.mubr.msk.f32.vlgmr.msra.gmra.mrb[6].mxu1 %vm713_vm5, %v939_v18 }
 0x7c7   :  { %3831 = vmatpush3.bf16.xpose.msk.msra.mxu1 %vm4420_vm4, %v3826_v14  ;;  %3590 = vmatprep.mubr.msk.f32.mxu1 %vm158_vm0, %v1028_v19 }
 0x7ce   :  { %3591 = vmatmul.mubr.msk.f32.vlgmr.msra.gmra.mrb[8].mxu1 %vm158_vm0, %v1030_v20 }
 0x899   :  { %v4482_v21 = vpop.f32.mrb[6].mxu1 }
 0x89a   :  { %v4484_v22 = vpop.f32.mrb[7].mxu1 }
 0x8a1   :  { %v3592_v23 = vpop.f32.mrb[8].mxu1 }
 0x8a2   :  { %v1119_v24 = vmul.f32 0.35355338, %v3592_v23  ;;  %v1109_v25 = vpop.f32.mrb[9].mxu1 }
 0x8a3   :  { %v1118_v26 = vmul.f32 0.35355338, %v1109_v25 }
 0x8a4   :  { %v1121_v27 = vadd.f32 %v1119_v24, %v4438_v6 }
 0x8a5   :  { %v1120_v28 = vadd.f32 %v1118_v26, %v4433_v1 }
 0x8a6   :  { %v1125_v29 = vsel %vm713_vm5, %v1121_v27, -inf }
 0x8a7   :  { %1126 = vmax.xlane.f32.xlu0 %v1125_v29  ;;  %v1122_v30 = vsel %vm713_vm5, %v1120_v28, -inf }
 0x8a8   :  { %1123 = vmax.xlane.f32.xlu1 %v1122_v30 }
 0x8b9   :  { %4005 = vrot.lane.b32.xlu1 %v4408_v57, %s4197_s25 }
 0x8bd   :  { %1231 = vrot.lane.b32.xlu1 %v4402_v56, %s4198_s26 }
 0x8c1   :  { %1233 = vrot.lane.b32.xlu1 %v4400_v54, %s4198_s26 }
 0x934   :  { %v1127_v31 = vpop.xlane.xlu0 %1126 }
 0x935   :  { %v1129_v32 = vsub.f32 %v1121_v27, %v1127_v31  ;;  %v1124_v33 = vpop.xlane.xlu1 %1123 }
 0x936   :  { %v1128_v35 = vsub.f32 %v1120_v28, %v1124_v33 }
 0x937   :  { %v1132_v37 = vmul.f32 1.442695, %v1129_v32 }
 0x938   :  { %v1130_v38 = vmul.f32 1.442695, %v1128_v35 }
 0x939   :  { %4083 = vpow2.f32 %v1132_v37  ;;  %v4006_v41 = vpop.permute.xlu1 %4005  ;;  %v1466_v37 = vld [vmem:[%s4909_s7 + $0xa8] sm:$0xff] }
 0x93a   :  { %v4008_v42 = vunpack.i.h.bf16 %v4006_v41  ;;  %v4007_v43 = vunpack.i.l.bf16 %v4006_v41  ;;  %4085 = vpow2.f32 %v1130_v38  ;;  %v1468_v38 = vld [vmem:[%s4909_s7 + $0xb8] sm:$0xff] }
 0x93c   :  { %v3832_v44 = vpack.c.bf16 %v4008_v42, %v4007_v43  ;;  %v1469_v42 = vld [vmem:[%s4909_s7 + $0xc0] sm:$0xff] }
 0x93d   :  { %v1232_v63 = vpop.permute.xlu1 %1231  ;;  %v3850_v43 = vpack.c.bf16 %v1469_v42, %v1468_v38  ;;  %v1698_v42 = vld [vmem:[%s4909_s7 + $0xc8] sm:$0xff] }
 0x93e   :  { %3833 = vmatprep.subr.bf16.mxu0 %v3832_v44 }
 0x93f   :  { %3835 = vmatpush3.bf16.msra.mxu0 %v3832_v44 }
 0x941   :  { %v1234_v0 = vpop.permute.xlu1 %1233 }
 0x943   :  { %v4084_v45 = vpop.eup %4083 }
 0x944   :  { %v1137_v56 = vsel %vm713_vm5, %v4084_v45, 0.0  ;;  %v4086_v46 = vpop.eup %4085 }
 0x945   :  { %1138 = vadd.xlane.f32.xlu0 %v1137_v56  ;;  %v1134_v54 = vsel %vm713_vm5, %v4086_v46, 0.0 }
 0x949   :  { %1135 = vadd.xlane.f32.xlu0 %v1134_v54 }
 0x95f   :  { %4010 = vrot.lane.b32.xlu0 %v4408_v57, %s4199_s1 }
 0x9d2   :  { %v1139_v47 = vpop.xlane.xlu0 %1138 }
 0x9d3   :  { %4087 = vrcp.f32 %v1139_v47 }
 0x9d6   :  { %v1136_v49 = vpop.xlane.xlu0 %1135 }
 0x9d7   :  { %4089 = vrcp.f32 %v1136_v49 }
 0x9da   :  { %v4011_v50 = vpop.permute.xlu0 %4010 }
 0x9db   :  { %v4013_v52 = vunpack.i.h.bf16 %v4011_v50  ;;  %v4012_v53 = vunpack.i.l.bf16 %v4011_v50 }
 0x9dd   :  { %v3836_v55 = vpack.c.bf16 %v4013_v52, %v4012_v53  ;;  %v4088_v58 = vpop.eup %4087 }
 0x9de   :  { %v1143_v62 = vmul.f32 %v4088_v58, %v4084_v45 }
 0x9df   :  { %3838 = vmatprep.subr.msk.bf16.mxu0 %vm4420_vm4, %v3836_v55 }
 0x9e1   :  { %v4090_v59 = vpop.eup %4089 }
 0x9e2   :  { %v1142_v60 = vmul.f32 %v4090_v59, %v4086_v46 }
 0x9e4   :  { %3597 = vmatprep.mubr.msk.f32.mxu0 %vm713_vm5, %v1142_v60 }
 0x9e5   :  { %3598 = vmatmul.mubr.msk.f32.vlgmr.msra.gmra.mrb[10].mxu0 %vm713_vm5, %v1143_v62 }
 0x9e6   :  { %3841 = vmatpush3.bf16.xpose.msk.msra.mxu0 %vm4420_vm4, %v3836_v55  ;;  %3604 = vmatprep.mubr.msk.f32.mxu0 %vm158_vm0, %v1232_v63 }
 0x9ed   :  { %3605 = vmatmul.mubr.msk.f32.vlgmr.msra.gmra.mrb[12].mxu0 %vm158_vm0, %v1234_v0 }
 0xab8   :  { %v3599_v2 = vpop.f32.mrb[10].mxu0 }
 0xab9   :  { %v1222_v5 = vpop.f32.mrb[11].mxu0 }
 0xac0   :  { %v3606_v7 = vpop.f32.mrb[12].mxu0 }
 0xac1   :  { %v1323_v8 = vmul.f32 0.35355338, %v3606_v7  ;;  %v1313_v9 = vpop.f32.mrb[13].mxu0 }
 0xac2   :  { %v1322_v10 = vmul.f32 0.35355338, %v1313_v9 }
 0xac3   :  { %v1325_v11 = vadd.f32 %v1323_v8, %v4438_v6 }
 0xac4   :  { %v1324_v12 = vadd.f32 %v1322_v10, %v4433_v1 }
 0xac5   :  { %v1329_v13 = vsel %vm713_vm5, %v1325_v11, -inf }
 0xac6   :  { %1330 = vmax.xlane.f32.xlu0 %v1329_v13  ;;  %v1326_v14 = vsel %vm713_vm5, %v1324_v12, -inf }
 0xac7   :  { %1327 = vmax.xlane.f32.xlu1 %v1326_v14 }
 0xad8   :  { %4015 = vrot.lane.b32.xlu1 %v4408_v57, %s4200_s27 }
 0xadc   :  { %1439 = vrot.lane.b32.xlu1 %v4482_v21, %s4201_s28 }
 0xae0   :  { %1445 = vrot.lane.b32.xlu1 %v1222_v5, %s4202_s29 }
 0xae4   :  { %1447 = vrot.lane.b32.xlu1 %v3599_v2, %s4202_s29 }
 0xb53   :  { %v1331_v15 = vpop.xlane.xlu0 %1330 }
 0xb54   :  { %v1333_v16 = vsub.f32 %v1325_v11, %v1331_v15  ;;  %v1328_v17 = vpop.xlane.xlu1 %1327 }
 0xb55   :  { %v1332_v18 = vsub.f32 %v1324_v12, %v1328_v17 }
 0xb56   :  { %v1336_v19 = vmul.f32 1.442695, %v1333_v16 }
 0xb57   :  { %v1334_v20 = vmul.f32 1.442695, %v1332_v18  ;;  %v1599_v18 = vld [vmem:[%s4911_s9 + $0x8] sm:$0xff] }
 0xb58   :  { %v4016_v23 = vpop.permute.xlu1 %4015 }
 0xb59   :  { %4091 = vpow2.f32 %v1334_v20  ;;  %v4018_v24 = vunpack.i.h.bf16 %v4016_v23  ;;  %v4017_v25 = vunpack.i.l.bf16 %v4016_v23  ;;  %v1600_v20 = vld [vmem:[%s4911_s9 + $0x10] sm:$0xff]  ;;  %v1601_v23 = vld [vmem:[%s4911_s9 + $0x18] sm:$0xff] }
 0xb5a   :  { %4093 = vpow2.f32 %v1336_v19 }
 0xb5b   :  { %v3842_v57 = vpack.c.bf16 %v4018_v24, %v4017_v25  ;;  %v3858_v24 = vpack.c.bf16 %v1601_v23, %v1600_v20 }
 0xb5c   :  { %v1440_v56 = vpop.permute.xlu1 %1439 }
 0xb5d   :  { %3843 = vmatprep.subr.bf16.mxu1 %v3842_v57  ;;  %v1460_v52 = vsel %vm158_vm0, %v4456_v39, %v1440_v56  ;;  %v1701_v56 = vld [vmem:[%s4909_s7 + $0xe0] sm:$0xff] }
 0xb5e   :  { %3845 = vmatpush3.bf16.msra.mxu1 %v3842_v57 }
 0xb60   :  { %v1446_v46 = vpop.permute.xlu1 %1445 }
 0xb63   :  { %v4092_v21 = vpop.eup %4091 }
 0xb64   :  { %v1338_v26 = vsel %vm713_vm5, %v4092_v21, 0.0  ;;  %v4094_v27 = vpop.eup %4093  ;;  %v1448_v47 = vpop.permute.xlu1 %1447 }
 0xb65   :  { %1339 = vadd.xlane.f32.xlu0 %v1338_v26  ;;  %v1341_v28 = vsel %vm713_vm5, %v4094_v27, 0.0  ;;  %v1462_v58 = vsel %vm713_vm5, %v1460_v52, %v1448_v47  ;;  %v1703_v47 = vld [vmem:[%s4909_s7 + $0xf0] sm:$0xff]  ;;  %v1705_v52 = vld [vmem:[%s4909_s7 + $0x100] sm:$0xff] }
 0xb69   :  { %1342 = vadd.xlane.f32.xlu0 %v1341_v28 }
 0xb7f   :  { %1437 = vrot.lane.b32.xlu0 %v4484_v22, %s4201_s28  ;;  %v1467_v22 = vld [vmem:[%s4909_s7 + $0xb0] sm:$0xff] }
 0xb80   :  { %v3846_v41 = vpack.c.bf16 %v1467_v22, %v1466_v37 }
 0xb82   :  { %3847 = vmatprep.subr.bf16.mxu1 %v3846_v41 }
 0xbf2   :  { %v1340_v29 = vpop.xlane.xlu0 %1339 }
 0xbf3   :  { %4095 = vrcp.f32 %v1340_v29 }
 0xbf6   :  { %v1343_v30 = vpop.xlane.xlu0 %1342 }
 0xbf7   :  { %4097 = vrcp.f32 %v1343_v30  ;;  %v3299_v30 = vld [vmem:[%s4909_s7 + $0x10a] ss:$0 sm:$0xff] }
 0xbfa   :  { %v1438_v54 = vpop.permute.xlu0 %1437 }
 0xbfb   :  { %v1459_v49 = vsel %vm158_vm0, %v4458_v40, %v1438_v54  ;;  %v3296_v40 = vld [vmem:[%s4909_s7 + $0x108] ss:$0 sm:$0xff] }
 0xbfc   :  { %v1461_v53 = vsel %vm713_vm5, %v1459_v49, %v1446_v46  ;;  %v1702_v54 = vld [vmem:[%s4909_s7 + $0xe8] sm:$0xff] }
 0xbfd   :  { %v4096_v31 = vpop.eup %4095  ;;  %v3870_v49 = vpack.c.bf16 %v1703_v47, %v1702_v54  ;;  %v3308_v54 = vld [vmem:[%s4909_s7 + $0x10d] ss:$0 sm:$0xff] }
 0xbfe   :  { %v1346_v32 = vmul.f32 %v4096_v31, %v4092_v21 }
 0xc00   :  { %3611 = vmatprep.mubr.msk.f32.mxu1 %vm713_vm5, %v1346_v32  ;;  %v3300_v32 = vld [vmem:[%s4909_s7 + $0x10b] ss:$0 sm:$0xff] }
 0xc01   :  { %v4098_v33 = vpop.eup %4097 }
 0xc02   :  { %v1347_v35 = vmul.f32 %v4098_v33, %v4094_v27 }
 0xc04   :  { %3612 = vmatmul.mubr.msk.f32.vlgmr.msra.gmra.mrb[10].mxu1 %vm713_vm5, %v1347_v35 }
 0xc05   :  { %3849 = vmatpush3.bf16.msra.mxu1 %v3846_v41 }
 0xc06   :  { %3851 = vmatprep.subr.bf16.mxu1 %v3850_v43 }
 0xc09   :  { %3853 = vmatpush3.bf16.msra.mxu1 %v3850_v43  ;;  %v1699_v43 = vld [vmem:[%s4909_s7 + $0xd0] sm:$0xff] }
 0xcd7   :  { %v3613_v44 = vpop.f32.mrb[10].mxu1 }
 0xcd8   :  { %1455 = vrot.lane.b32.xlu1 %v3613_v44, %s4203_s19  ;;  %v1426_v45 = vpop.f32.mrb[11].mxu1  ;;  %v3862_v44 = vpack.c.bf16 %v1699_v43, %v1698_v42 }
 0xcd9   :  { %1453 = vrot.lane.b32.xlu0 %v1426_v45, %s4203_s19  ;;  %v1700_v45 = vld [vmem:[%s4909_s7 + $0xd8] sm:$0xff] }
 0xcda   :  { %3863 = vmatprep.subr.bf16.mxu1 %v3862_v44  ;;  %v3866_v46 = vpack.c.bf16 %v1701_v56, %v1700_v45 }
 0xd4a   :  { %v1456_v50 = vpop.permute.xlu1 %1455 }
 0xd4b   :  { %v1454_v55 = vpop.permute.xlu0 %1453  ;;  %v1465_v60 = vsel %vm1463_vm6, %v1462_v58, %v1456_v50  ;;  %v1704_v50 = vld [vmem:[%s4909_s7 + $0xf8] sm:$0xff] }
 0xd4c   :  { %v1464_v59 = vsel %vm1463_vm6, %v1461_v53, %v1454_v55  ;;  %v3874_v53 = vpack.c.bf16 %v1705_v52, %v1704_v50  ;;  %v3301_v55 = vld [vmem:[%s4911_s9 + $0x20] ss:$0 sm:$0xff] }
 0xd4d   :  { %3622 = vmatprep.mubr.msk.f32.mxu1 %vm358_vm3, %v1464_v59 }
 0xd4e   :  { %3623 = vmatmul.mubr.msk.f32.vlgmr.msra.gmra.mrb[12].mxu1 %vm358_vm3, %v1465_v60 }
 0xd4f   :  { %3865 = vmatpush3.bf16.msra.mxu1 %v3862_v44  ;;  %v3307_v44 = vld [vmem:[%s4909_s7 + $0x10c] ss:$0 sm:$0xff] }
 0xd50   :  { %3867 = vmatprep.subr.bf16.mxu1 %v3866_v46 }
 0xd53   :  { %3869 = vmatpush3.bf16.msra.mxu1 %v3866_v46 }
 0xd54   :  { %3871 = vmatprep.subr.bf16.mxu1 %v3870_v49 }
 0xd57   :  { %3873 = vmatpush3.bf16.msra.mxu1 %v3870_v49 }
 0xd58   :  { %3875 = vmatprep.subr.bf16.mxu1 %v3874_v53 }
 0xd5b   :  { %3877 = vmatpush3.bf16.msra.mxu1 %v3874_v53  ;;  %v3309_v53 = vld [vmem:[%s4910_s8 + $0x48] ss:$0 sm:$0xff] }
 0xe21   :  { %v3624_v62 = vpop.f32.mrb[12].mxu1 }
 0xe22   :  { %v1553_v63 = vadd.f32 %v3624_v62, %v3296_v40  ;;  %v1547_v39 = vpop.f32.mrb[13].mxu1 }
 0xe23   :  { %v1548_v0 = vadd.f32 %v3296_v40, %v1547_v39 }
 0xe24   :  { %v1557_v2 = vadd.f32 %v1553_v63, %v4393_v51 }
 0xe25   :  { %v1556_v5 = vadd.f32 %v1548_v0, %v4389_v48  ;;  %v1598_v48 = vld [vmem:[%s4911_s9] sm:$0xff] }
 0xe26   :  { %v1563_v7 = vsel %vm358_vm3, %v1557_v2, 0.0  ;;  %v3854_v19 = vpack.c.bf16 %v1599_v18, %v1598_v48 }
 0xe27   :  { %1564 = vadd.xlane.f32.xlu1 %v1563_v7  ;;  %v1560_v8 = vsel %vm358_vm3, %v1556_v5, 0.0 }
 0xe28   :  { %1561 = vadd.xlane.f32.xlu0 %v1560_v8  ;;  %3855 = vmatprep.subr.bf16.mxu0 %v3854_v19 }
 0xe29   :  { %3857 = vmatpush3.bf16.msra.mxu0 %v3854_v19 }
 0xe2a   :  { %3859 = vmatprep.subr.bf16.mxu0 %v3858_v24 }
 0xe2d   :  { %3861 = vmatpush3.bf16.msra.mxu0 %v3858_v24 }
 0xeb4   :  { %v1565_v9 = vpop.xlane.xlu1 %1564 }
 0xeb5   :  { %v1567_v10 = vmul.f32 0.03125, %v1565_v9  ;;  %v1562_v11 = vpop.xlane.xlu0 %1561 }
 0xeb6   :  { %v1566_v12 = vmul.f32 0.03125, %v1562_v11  ;;  %v3304_v11 = vld [vmem:[%s4909_s7 + $0x109] ss:$0 sm:$0xff] }
 0xeb7   :  { %v1569_v13 = vsub.f32 %v1557_v2, %v1567_v10 }
 0xeb8   :  { %v1568_v14 = vsub.f32 %v1556_v5, %v1566_v12 }
 0xeb9   :  { %v1571_v17 = vmul.f32 %v1569_v13, %v1569_v13 }
 0xeba   :  { %v1570_v15 = vmul.f32 %v1568_v14, %v1568_v14 }
 0xebb   :  { %v1575_v51 = vsel %vm358_vm3, %v1571_v17, 0.0 }
 0xebc   :  { %v1572_v16 = vsel %vm358_vm3, %v1570_v15, 0.0 }
 0xebd   :  { %1573 = vadd.xlane.f32.xlu0 %v1572_v16 }
 0xec1   :  { %1576 = vadd.xlane.f32.xlu0 %v1575_v51 }
 0xf4a   :  { %v1574_v25 = vpop.xlane.xlu0 %1573 }
 0xf4b   :  { %v1578_v57 = vmul.f32 0.03125, %v1574_v25 }
 0xf4d   :  { %v1580_v21 = vadd.f32 1e-12, %v1578_v57 }
 0xf4e   :  { %v1577_v26 = vpop.xlane.xlu0 %1576 }
 0xf4f   :  { %4099 = vrsqrt.f32 %v1580_v21  ;;  %v1579_v27 = vmul.f32 0.03125, %v1577_v26 }
 0xf51   :  { %v1581_v28 = vadd.f32 1e-12, %v1579_v27 }
 0xf53   :  { %4101 = vrsqrt.f32 %v1581_v28  ;;  %v1834_v28 = vld [vmem:[%s4910_s8 + $0x28] sm:$0xff] }
 0xf59   :  { %v4100_v29 = vpop.eup %4099 }
 0xf5a   :  { %v1584_v31 = vmul.f32 %v4100_v29, %v1568_v14  ;;  %v1835_v29 = vld [vmem:[%s4910_s8 + $0x30] sm:$0xff] }
 0xf5c   :  { %v1590_v33 = vmul.f32 %v3299_v30, %v1584_v31  ;;  %v1836_v31 = vld [vmem:[%s4910_s8 + $0x38] sm:$0xff] }
 0xf5d   :  { %v4102_v35 = vpop.eup %4101 }
 0xf5e   :  { %v1585_v37 = vmul.f32 %v4102_v35, %v1569_v13  ;;  %v1596_v22 = vadd.f32 %v3300_v32, %v1590_v33 }
 0xf60   :  { %v1591_v38 = vmul.f32 %v3299_v30, %v1585_v37  ;;  %3633 = vmatprep.mubr.msk.f32.mxu0 %vm358_vm3, %v1596_v22  ;;  %v3878_v30 = vpack.c.bf16 %v1835_v29, %v1834_v28 }
 0xf62   :  { %v1597_v41 = vadd.f32 %v3300_v32, %v1591_v38  ;;  %3879 = vmatprep.subr.bf16.mxu0 %v3878_v30  ;;  %v1837_v32 = vld [vmem:[%s4910_s8 + $0x40] sm:$0xff] }
 0xf63   :  { %v3882_v33 = vpack.c.bf16 %v1837_v32, %v1836_v31 }
 0xf64   :  { %3634 = vmatmul.mubr.msk.f32.vlgmr.msra.gmra.mrb[14].mxu0 %vm358_vm3, %v1597_v41 }
 0xf65   :  { %3881 = vmatpush3.bf16.msra.mxu0 %v3878_v30 }
 0xf66   :  { %3883 = vmatprep.subr.bf16.mxu0 %v3882_v33 }
 0xf69   :  { %3885 = vmatpush3.bf16.msra.mxu0 %v3882_v33 }
0x1037   :  { %v3635_v58 = vpop.f32.mrb[14].mxu0 }
0x1038   :  { %v1685_v59 = vadd.f32 %v3635_v58, %v3301_v55  ;;  %v1679_v60 = vpop.f32.mrb[15].mxu0 }
0x1039   :  { %v1680_v40 = vadd.f32 %v3301_v55, %v1679_v60 }
0x103a   :  { %v1691_v62 = vmul.f32 0.70710677, %v1685_v59  ;;  %v1689_v8 = vmul.f32 0.5, %v1685_v59 }
0x103b   :  { %v1690_v63 = vmul.f32 0.70710677, %v1680_v40  ;;  %v1688_v5 = vmul.f32 0.5, %v1680_v40 }
0x103c   :  { %4103 = verf.f32 %v1691_v62 }
0x103d   :  { %4105 = verf.f32 %v1690_v63 }
0x1046   :  { %v4104_v39 = vpop.eup %4103 }
0x1047   :  { %v4106_v0 = vpop.eup %4105  ;;  %v1695_v2 = vadd.f32 1.0, %v4104_v39 }
0x1048   :  { %v1694_v7 = vadd.f32 1.0, %v4106_v0 }
0x1049   :  { %v1697_v10 = vmul.f32 %v1695_v2, %v1689_v8 }
0x104a   :  { %v1696_v9 = vmul.f32 %v1694_v7, %v1688_v5 }
0x104c   :  { %3652 = vmatprep.mubr.msk.f32.mxu1 %vm50_vm2, %v1696_v9 }
0x104d   :  { %3653 = vmatmul.mubr.msk.f32.vlgmr.msra.gmra.mrb[14].mxu1 %vm50_vm2, %v1697_v10 }
0x1120   :  { %v3654_v12 = vpop.f32.mrb[14].mxu1 }
0x1121   :  { %v1789_v13 = vadd.f32 %v3654_v12, %v3304_v11  ;;  %v1783_v14 = vpop.f32.mrb[15].mxu1 }
0x1122   :  { %v1784_v15 = vadd.f32 %v3304_v11, %v1783_v14 }
0x1123   :  { %v1793_v16 = vadd.f32 %v1789_v13, %v1597_v41 }
0x1124   :  { %v1792_v17 = vadd.f32 %v1784_v15, %v1596_v22 }
0x1125   :  { %v1799_v51 = vsel %vm358_vm3, %v1793_v16, 0.0 }
0x1126   :  { %1800 = vadd.xlane.f32.xlu1 %v1799_v51  ;;  %v1796_v48 = vsel %vm358_vm3, %v1792_v17, 0.0 }
0x1127   :  { %1797 = vadd.xlane.f32.xlu0 %v1796_v48 }
0x11b3   :  { %v1801_v18 = vpop.xlane.xlu1 %1800 }
0x11b4   :  { %v1803_v19 = vmul.f32 0.03125, %v1801_v18  ;;  %v1798_v20 = vpop.xlane.xlu0 %1797 }
0x11b5   :  { %v1802_v23 = vmul.f32 0.03125, %v1798_v20 }
0x11b6   :  { %v1805_v24 = vsub.f32 %v1793_v16, %v1803_v19 }
0x11b7   :  { %v1804_v25 = vsub.f32 %v1792_v17, %v1802_v23 }
0x11b8   :  { %v1807_v57 = vmul.f32 %v1805_v24, %v1805_v24 }
0x11b9   :  { %v1806_v21 = vmul.f32 %v1804_v25, %v1804_v25 }
0x11ba   :  { %v1811_v26 = vsel %vm358_vm3, %v1807_v57, 0.0 }
0x11bb   :  { %1812 = vadd.xlane.f32.xlu1 %v1811_v26  ;;  %v1808_v27 = vsel %vm358_vm3, %v1806_v21, 0.0 }
0x11bc   :  { %1809 = vadd.xlane.f32.xlu0 %v1808_v27 }
0x1248   :  { %v1813_v35 = vpop.xlane.xlu1 %1812 }
0x1249   :  { %v1815_v37 = vmul.f32 0.03125, %v1813_v35  ;;  %v1810_v22 = vpop.xlane.xlu0 %1809 }
0x124a   :  { %v1814_v38 = vmul.f32 0.03125, %v1810_v22 }
0x124b   :  { %v1817_v41 = vadd.f32 1e-12, %v1815_v37 }
0x124c   :  { %v1816_v42 = vadd.f32 1e-12, %v1814_v38 }
0x124d   :  { %4107 = vrsqrt.f32 %v1817_v41 }
0x124e   :  { %4109 = vrsqrt.f32 %v1816_v42 }
0x1257   :  { %v4108_v43 = vpop.eup %4107 }
0x1258   :  { %v4110_v45 = vpop.eup %4109  ;;  %v1821_v56 = vmul.f32 %v4108_v43, %v1805_v24 }
0x1259   :  { %v1820_v46 = vmul.f32 %v4110_v45, %v1804_v25 }
0x125a   :  { %v1827_v47 = vmul.f32 %v3307_v44, %v1821_v56 }
0x125b   :  { %v1826_v49 = vmul.f32 %v3307_v44, %v1820_v46 }
0x125c   :  { %v4633_v52 = vadd.f32 %v3308_v54, %v1827_v47 }
0x125d   :  { %v4631_v50 = vadd.f32 %v3308_v54, %v1826_v49 }
0x125f   :  { %3663 = vmatprep.mubr.msk.f32.mxu0 %vm358_vm3, %v4631_v50 }
0x1260   :  { %3664 = vmatmul.mubr.msk.f32.vlgmr.msra.gmra.mrb[16].mxu0 %vm358_vm3, %v4633_v52 }
0x1333   :  { %v3665_v55 = vpop.f32.mrb[16].mxu0 }
0x1334   :  { %v4642_v58 = vadd.f32 %v3665_v55, %v3309_v53  ;;  %v1915_v59 = vpop.f32.mrb[17].mxu0 }
0x1335   :  { %v4644_v60 = vadd.f32 %v3309_v53, %v1915_v59 }
0x1337   :  { %3670 = vmatprep.mubr.msk.f32.mxu0 %vm158_vm0, %v4644_v60  ;;  %v4650_v40 = vpack.i.bf16 %v4642_v58, %v4644_v60 }
0x1339   :  { %4025 = vrot.lane.b32.xlu1 %v4650_v40, %s4191_s18  ;;  %4020 = vrot.lane.b32.xlu0 %v4650_v40, %s4190_s17 }
0x133d   :  { %2126 = vrot.lane.b32.xlu1 %v4644_v60, %s4192_s0 }
0x1341   :  { %2128 = vrot.lane.b32.xlu1 %v4642_v58, %s4192_s0 }
0x13ab   :  { %v4026_v62 = vpop.permute.xlu1 %4025  ;;  %v4021_v63 = vpop.permute.xlu0 %4020 }
0x13ac   :  { %v4028_v39 = vunpack.i.h.bf16 %v4026_v62  ;;  %v4027_v0 = vunpack.i.l.bf16 %v4026_v62  ;;  %v4023_v2 = vunpack.i.h.bf16 %v4021_v63  ;;  %v4022_v5 = vunpack.i.l.bf16 %v4021_v63 }
0x13ae   :  { %v3886_v7 = vpack.c.bf16 %v4023_v2, %v4022_v5  ;;  %v3896_v8 = vpack.c.bf16 %v4028_v39, %v4027_v0 }
0x13af   :  { %v2127_v9 = vpop.permute.xlu1 %2126 }
0x13b0   :  { %3888 = vmatprep.subr.msk.bf16.mxu0 %vm4420_vm4, %v3886_v7 }
0x13b1   :  { %3891 = vmatpush3.bf16.xpose.msk.msra.mxu0 %vm4420_vm4, %v3886_v7 }
0x13b2   :  { %3898 = vmatprep.subr.msk.bf16.mxu0 %vm4420_vm4, %v3896_v8 }
0x13b3   :  { %v2129_v10 = vpop.permute.xlu1 %2128 }
0x13b8   :  { %3671 = vmatmul.mubr.msk.f32.vlgmr.msra.gmra.mrb[18].mxu0 %vm158_vm0, %v4642_v58 }
0x13b9   :  { %3901 = vmatpush3.bf16.xpose.msk.msra.mxu0 %vm4420_vm4, %v3896_v8  ;;  %3684 = vmatprep.mubr.msk.f32.mxu0 %vm158_vm0, %v2127_v9 }
0x13c0   :  { %3685 = vmatmul.mubr.msk.f32.vlgmr.msra.gmra.mrb[20].mxu0 %vm158_vm0, %v2129_v10 }
0x148b   :  { %v3672_v11 = vpop.f32.mrb[18].mxu0 }
0x148c   :  { %v2014_v12 = vmul.f32 0.35355338, %v3672_v11  ;;  %v2004_v13 = vpop.f32.mrb[19].mxu0 }
0x148d   :  { %v2013_v14 = vmul.f32 0.35355338, %v2004_v13 }
0x148e   :  { %v2016_v15 = vadd.f32 %v2014_v12, %v4438_v6 }
0x148f   :  { %v2015_v16 = vadd.f32 %v2013_v14, %v4433_v1 }
0x1490   :  { %v2020_v17 = vsel %vm713_vm5, %v2016_v15, -inf }
0x1491   :  { %2021 = vmax.xlane.f32.xlu1 %v2020_v17  ;;  %v2017_v51 = vsel %vm713_vm5, %v2015_v16, -inf }
0x1492   :  { %2018 = vmax.xlane.f32.xlu0 %v2017_v51 }
0x1493   :  { %v3686_v48 = vpop.f32.mrb[20].mxu0 }
0x1494   :  { %v2208_v18 = vpop.f32.mrb[21].mxu0  ;;  %v2218_v19 = vmul.f32 0.35355338, %v3686_v48 }
0x1495   :  { %v2217_v20 = vmul.f32 0.35355338, %v2208_v18 }
0x1496   :  { %v2220_v25 = vadd.f32 %v2218_v19, %v4438_v6 }
0x1497   :  { %v2219_v23 = vadd.f32 %v2217_v20, %v4433_v1 }
0x1498   :  { %v2224_v57 = vsel %vm713_vm5, %v2220_v25, -inf }
0x1499   :  { %v2221_v24 = vsel %vm713_vm5, %v2219_v23, -inf }
0x149a   :  { %2222 = vmax.xlane.f32.xlu0 %v2221_v24 }
0x149e   :  { %2225 = vmax.xlane.f32.xlu0 %v2224_v57 }
0x151e   :  { %v2022_v21 = vpop.xlane.xlu1 %2021 }
0x151f   :  { %v2024_v26 = vsub.f32 %v2016_v15, %v2022_v21  ;;  %v2019_v27 = vpop.xlane.xlu0 %2018  ;;  %v4161_v21 = vld [vmem:[%s4907_s5 + $0x8] sm:$0xff] }
0x1520   :  { %v2023_v28 = vsub.f32 %v2015_v16, %v2019_v27  ;;  %v4162_v27 = vld [vmem:[%s4907_s5] sm:$0xff] }
0x1521   :  { %v2027_v29 = vmul.f32 1.442695, %v2024_v26 }
0x1522   :  { %v2025_v30 = vmul.f32 1.442695, %v2023_v28 }
0x1523   :  { %4111 = vpow2.f32 %v2027_v29 }
0x1524   :  { %4113 = vpow2.f32 %v2025_v30 }
0x1527   :  { %v2223_v31 = vpop.xlane.xlu0 %2222 }
0x1528   :  { %v2227_v32 = vsub.f32 %v2219_v23, %v2223_v31 }
0x152a   :  { %v2229_v33 = vmul.f32 1.442695, %v2227_v32 }
0x152b   :  { %v2226_v1 = vpop.xlane.xlu0 %2225 }
0x152c   :  { %4115 = vpow2.f32 %v2229_v33  ;;  %v2228_v35 = vsub.f32 %v2220_v25, %v2226_v1 }
0x152d   :  { %v4112_v37 = vpop.eup %4111 }
0x152e   :  { %v4114_v6 = vpop.eup %4113  ;;  %v2231_v22 = vmul.f32 1.442695, %v2228_v35  ;;  %v2032_v38 = vsel %vm713_vm5, %v4112_v37, 0.0 }
0x152f   :  { %2033 = vadd.xlane.f32.xlu1 %v2032_v38  ;;  %v2029_v41 = vsel %vm713_vm5, %v4114_v6, 0.0 }
0x1530   :  { %4117 = vpow2.f32 %v2231_v22  ;;  %2030 = vadd.xlane.f32.xlu0 %v2029_v41 }
0x1536   :  { %v4116_v42 = vpop.eup %4115 }
0x1537   :  { %v2233_v43 = vsel %vm713_vm5, %v4116_v42, 0.0 }
0x1538   :  { %2234 = vadd.xlane.f32.xlu0 %v2233_v43 }
0x153a   :  { %v4118_v44 = vpop.eup %4117 }
0x153b   :  { %v2236_v45 = vsel %vm713_vm5, %v4118_v44, 0.0 }
0x153c   :  { %2237 = vadd.xlane.f32.xlu1 %v2236_v45 }
0x154d   :  { %4035 = vrot.lane.b32.xlu1 %v4650_v40, %s4194_s22 }
0x154e   :  { %4030 = vrot.lane.b32.xlu0 %v4650_v40, %s4193_s21 }
0x1551   :  { %4040 = vrot.lane.b32.xlu1 %v4650_v40, %s4196_s24 }
0x1552   :  { %2332 = vrot.lane.b32.xlu0 %v4642_v58, %s4195_s23 }
0x1555   :  { %2330 = vrot.lane.b32.xlu1 %v4644_v60, %s4195_s23 }
0x15bc   :  { %v2034_v46 = vpop.xlane.xlu1 %2033 }
0x15bd   :  { %v2031_v56 = vpop.xlane.xlu0 %2030 }
0x15be   :  { %4119 = vrcp.f32 %v2031_v56 }
0x15bf   :  { %4121 = vrcp.f32 %v2034_v46 }
0x15c5   :  { %v2235_v54 = vpop.xlane.xlu0 %2234 }
0x15c6   :  { %4123 = vrcp.f32 %v2235_v54 }
0x15c8   :  { %v4120_v47 = vpop.eup %4119 }
0x15c9   :  { %v2238_v49 = vpop.xlane.xlu1 %2237  ;;  %v4031_v53 = vpop.permute.xlu0 %4030  ;;  %v2037_v55 = vmul.f32 %v4120_v47, %v4114_v6 }
0x15ca   :  { %4125 = vrcp.f32 %v2238_v49  ;;  %v4033_v59 = vunpack.i.h.bf16 %v4031_v53  ;;  %v4032_v62 = vunpack.i.l.bf16 %v4031_v53  ;;  %v4122_v39 = vpop.eup %4121 }
0x15cb   :  { %3677 = vmatprep.mubr.msk.f32.mxu1 %vm713_vm5, %v2037_v55  ;;  %v2038_v8 = vmul.f32 %v4122_v39, %v4112_v37 }
0x15cc   :  { %v3892_v63 = vpack.c.bf16 %v4033_v59, %v4032_v62 }
0x15cd   :  { %v4036_v0 = vpop.permute.xlu1 %4035  ;;  %v2333_v51 = vpop.permute.xlu0 %2332 }
0x15ce   :  { %v4038_v2 = vunpack.i.h.bf16 %v4036_v0  ;;  %v4037_v5 = vunpack.i.l.bf16 %v4036_v0  ;;  %3893 = vmatprep.subr.bf16.mxu1 %v3892_v63 }
0x15cf   :  { %3895 = vmatpush3.bf16.msra.mxu1 %v3892_v63 }
0x15d0   :  { %v4124_v7 = vpop.eup %4123  ;;  %v3902_v9 = vpack.c.bf16 %v4038_v2, %v4037_v5 }
0x15d1   :  { %v4041_v10 = vpop.permute.xlu1 %4040  ;;  %v2241_v11 = vmul.f32 %v4124_v7, %v4116_v42 }
0x15d2   :  { %v4043_v12 = vunpack.i.h.bf16 %v4041_v10  ;;  %v4042_v13 = vunpack.i.l.bf16 %v4041_v10  ;;  %3678 = vmatmul.mubr.msk.f32.vlgmr.msra.gmra.mrb[16].mxu1 %vm713_vm5, %v2038_v8  ;;  %3903 = vmatprep.subr.bf16.mxu1 %v3902_v9 }
0x15d3   :  { %3905 = vmatpush3.bf16.msra.mxu1 %v3902_v9  ;;  %3691 = vmatprep.mubr.msk.f32.mxu1 %vm713_vm5, %v2241_v11 }
0x15d4   :  { %v4126_v14 = vpop.eup %4125  ;;  %v3906_v15 = vpack.c.bf16 %v4043_v12, %v4042_v13 }
0x15d5   :  { %v2242_v16 = vmul.f32 %v4126_v14, %v4118_v44  ;;  %v2331_v17 = vpop.permute.xlu1 %2330 }
0x15d6   :  { %3908 = vmatprep.subr.msk.bf16.mxu1 %vm4420_vm4, %v3906_v15 }
0x15d7   :  { %3692 = vmatmul.mubr.msk.f32.vlgmr.msra.gmra.mrb[18].mxu1 %vm713_vm5, %v2242_v16 }
0x15d8   :  { %3698 = vmatprep.mubr.msk.f32.mxu1 %vm158_vm0, %v2331_v17 }
0x15dc   :  { %3911 = vmatpush3.bf16.xpose.msk.msra.mxu1 %vm4420_vm4, %v3906_v15 }
0x15e3   :  { %3699 = vmatmul.mubr.msk.f32.vlgmr.msra.gmra.mrb[20].mxu1 %vm158_vm0, %v2333_v51 }
0x16a5   :  { %v4704_v48 = vpop.f32.mrb[16].mxu1 }
0x16a6   :  { %v4706_v18 = vpop.f32.mrb[17].mxu1 }
0x16aa   :  { %v4708_v19 = vpop.f32.mrb[18].mxu1 }
0x16ab   :  { %v4710_v20 = vpop.f32.mrb[19].mxu1 }
0x16b6   :  { %v3700_v23 = vpop.f32.mrb[20].mxu1 }
0x16b7   :  { %v2422_v24 = vmul.f32 0.35355338, %v3700_v23  ;;  %v2412_v25 = vpop.f32.mrb[21].mxu1 }
0x16b8   :  { %v2421_v57 = vmul.f32 0.35355338, %v2412_v25 }
0x16b9   :  { %v2424_v26 = vadd.f32 %v4161_v21, %v2422_v24 }
0x16ba   :  { %v2423_v28 = vadd.f32 %v4162_v27, %v2421_v57 }
0x16bb   :  { %v2428_v29 = vsel %vm713_vm5, %v2424_v26, -inf }
0x16bc   :  { %2429 = vmax.xlane.f32.xlu0 %v2428_v29  ;;  %v2425_v30 = vsel %vm713_vm5, %v2423_v28, -inf }
0x16bd   :  { %2426 = vmax.xlane.f32.xlu1 %v2425_v30 }
0x16ce   :  { %4045 = vrot.lane.b32.xlu1 %v4650_v40, %s4197_s25 }
0x16d2   :  { %2534 = vrot.lane.b32.xlu1 %v4644_v60, %s4198_s26 }
0x16d6   :  { %2536 = vrot.lane.b32.xlu1 %v4642_v58, %s4198_s26 }
0x1749   :  { %v2430_v31 = vpop.xlane.xlu0 %2429 }
0x174a   :  { %v2432_v32 = vsub.f32 %v2424_v26, %v2430_v31  ;;  %v2427_v33 = vpop.xlane.xlu1 %2426 }
0x174b   :  { %v2431_v1 = vsub.f32 %v2423_v28, %v2427_v33  ;;  %v2770_v33 = vld [vmem:[%s4909_s7 + $0x120] sm:$0xff] }
0x174c   :  { %v2435_v35 = vmul.f32 1.442695, %v2432_v32  ;;  %v2768_v32 = vld [vmem:[%s4909_s7 + $0x110] sm:$0xff] }
0x174d   :  { %v2433_v37 = vmul.f32 1.442695, %v2431_v1 }
0x174e   :  { %4127 = vpow2.f32 %v2435_v35  ;;  %v4046_v6 = vpop.permute.xlu1 %4045  ;;  %v2771_v35 = vld [vmem:[%s4909_s7 + $0x128] sm:$0xff] }
0x174f   :  { %v4048_v22 = vunpack.i.h.bf16 %v4046_v6  ;;  %v4047_v38 = vunpack.i.l.bf16 %v4046_v6  ;;  %4129 = vpow2.f32 %v2433_v37  ;;  %v3930_v37 = vpack.c.bf16 %v2771_v35, %v2770_v33  ;;  %v3003_v35 = vld [vmem:[%s4909_s7 + $0x148] sm:$0xff] }
0x1751   :  { %v3912_v41 = vpack.c.bf16 %v4048_v22, %v4047_v38 }
0x1752   :  { %v2535_v62 = vpop.permute.xlu1 %2534 }
0x1753   :  { %3913 = vmatprep.subr.bf16.mxu0 %v3912_v41 }
0x1754   :  { %3915 = vmatpush3.bf16.msra.mxu0 %v3912_v41 }
0x1756   :  { %v2537_v63 = vpop.permute.xlu1 %2536 }
0x1758   :  { %v4128_v42 = vpop.eup %4127 }
0x1759   :  { %v2440_v60 = vsel %vm713_vm5, %v4128_v42, 0.0  ;;  %v4130_v43 = vpop.eup %4129 }
0x175a   :  { %2441 = vadd.xlane.f32.xlu0 %v2440_v60  ;;  %v2437_v58 = vsel %vm713_vm5, %v4130_v43, 0.0 }
0x175e   :  { %2438 = vadd.xlane.f32.xlu0 %v2437_v58 }
0x1774   :  { %4050 = vrot.lane.b32.xlu0 %v4650_v40, %s4199_s1 }
0x17e7   :  { %v2442_v44 = vpop.xlane.xlu0 %2441 }
0x17e8   :  { %4131 = vrcp.f32 %v2442_v44 }
0x17eb   :  { %v2439_v45 = vpop.xlane.xlu0 %2438 }
0x17ec   :  { %4133 = vrcp.f32 %v2439_v45 }
0x17ef   :  { %v4051_v56 = vpop.permute.xlu0 %4050 }
0x17f0   :  { %v4053_v46 = vunpack.i.h.bf16 %v4051_v56  ;;  %v4052_v54 = vunpack.i.l.bf16 %v4051_v56 }
0x17f2   :  { %v3916_v47 = vpack.c.bf16 %v4053_v46, %v4052_v54  ;;  %v4132_v49 = vpop.eup %4131 }
0x17f3   :  { %v2446_v59 = vmul.f32 %v4132_v49, %v4128_v42 }
0x17f4   :  { %3918 = vmatprep.subr.msk.bf16.mxu0 %vm4420_vm4, %v3916_v47 }
0x17f6   :  { %v4134_v53 = vpop.eup %4133 }
0x17f7   :  { %v2445_v55 = vmul.f32 %v4134_v53, %v4130_v43 }
0x17f9   :  { %3705 = vmatprep.mubr.msk.f32.mxu0 %vm713_vm5, %v2445_v55 }
0x17fa   :  { %3706 = vmatmul.mubr.msk.f32.vlgmr.msra.gmra.mrb[22].mxu0 %vm713_vm5, %v2446_v59 }
0x17fb   :  { %3921 = vmatpush3.bf16.xpose.msk.msra.mxu0 %vm4420_vm4, %v3916_v47  ;;  %3712 = vmatprep.mubr.msk.f32.mxu0 %vm158_vm0, %v2535_v62 }
0x1802   :  { %3713 = vmatmul.mubr.msk.f32.vlgmr.msra.gmra.mrb[24].mxu0 %vm158_vm0, %v2537_v63 }
0x18cd   :  { %v3707_v39 = vpop.f32.mrb[22].mxu0 }
0x18ce   :  { %v2525_v0 = vpop.f32.mrb[23].mxu0 }
0x18d5   :  { %v3714_v2 = vpop.f32.mrb[24].mxu0 }
0x18d6   :  { %v2626_v5 = vmul.f32 0.35355338, %v3714_v2  ;;  %v2616_v7 = vpop.f32.mrb[25].mxu0 }
0x18d7   :  { %v2625_v8 = vmul.f32 0.35355338, %v2616_v7 }
0x18d8   :  { %v2628_v9 = vadd.f32 %v4161_v21, %v2626_v5 }
0x18d9   :  { %v2627_v10 = vadd.f32 %v4162_v27, %v2625_v8 }
0x18da   :  { %v2632_v11 = vsel %vm713_vm5, %v2628_v9, -inf }
0x18db   :  { %2633 = vmax.xlane.f32.xlu0 %v2632_v11  ;;  %v2629_v12 = vsel %vm713_vm5, %v2627_v10, -inf }
0x18dc   :  { %2630 = vmax.xlane.f32.xlu1 %v2629_v12 }
0x18ed   :  { %4055 = vrot.lane.b32.xlu1 %v4650_v40, %s4200_s27 }
0x18f1   :  { %2742 = vrot.lane.b32.xlu1 %v4708_v19, %s4201_s28 }
0x18f5   :  { %2748 = vrot.lane.b32.xlu1 %v2525_v0, %s4202_s29 }
0x18f9   :  { %2750 = vrot.lane.b32.xlu1 %v3707_v39, %s4202_s29 }
0x1968   :  { %v2634_v61 = vpop.xlane.xlu0 %2633 }
0x1969   :  { %v2636_v13 = vsub.f32 %v2628_v9, %v2634_v61  ;;  %v2631_v14 = vpop.xlane.xlu1 %2630  ;;  %v2901_v61 = vld [vmem:[%s4911_s9 + $0x30] sm:$0xff] }
0x196a   :  { %v2635_v15 = vsub.f32 %v2627_v10, %v2631_v14  ;;  %v2902_v14 = vld [vmem:[%s4911_s9 + $0x38] sm:$0xff] }
0x196b   :  { %v2639_v16 = vmul.f32 1.442695, %v2636_v13 }
0x196c   :  { %v2637_v17 = vmul.f32 1.442695, %v2635_v15  ;;  %v2903_v15 = vld [vmem:[%s4911_s9 + $0x40] sm:$0xff] }
0x196d   :  { %v4056_v51 = vpop.permute.xlu1 %4055 }
0x196e   :  { %4135 = vpow2.f32 %v2637_v17  ;;  %v4058_v23 = vunpack.i.h.bf16 %v4056_v51  ;;  %v4057_v24 = vunpack.i.l.bf16 %v4056_v51 }
0x196f   :  { %4137 = vpow2.f32 %v2639_v16  ;;  %v3938_v16 = vpack.c.bf16 %v2903_v15, %v2902_v14  ;;  %v3251_v14 = vld [vmem:[%s4909_s7 + $0x90] ss:$0 sm:$0xff] }
0x1970   :  { %v3922_v25 = vpack.c.bf16 %v4058_v23, %v4057_v24 }
0x1971   :  { %v2743_v38 = vpop.permute.xlu1 %2742 }
0x1972   :  { %3923 = vmatprep.subr.bf16.mxu1 %v3922_v25  ;;  %v2763_v44 = vsel %vm158_vm0, %v4704_v48, %v2743_v38  ;;  %v3006_v38 = vld [vmem:[%s4909_s7 + $0x160] sm:$0xff] }
0x1973   :  { %3925 = vmatpush3.bf16.msra.mxu1 %v3922_v25 }
0x1975   :  { %v2749_v41 = vpop.permute.xlu1 %2748 }
0x1978   :  { %v4136_v40 = vpop.eup %4135 }
0x1979   :  { %v2641_v19 = vsel %vm713_vm5, %v4136_v40, 0.0  ;;  %v4138_v57 = vpop.eup %4137  ;;  %v2751_v60 = vpop.permute.xlu1 %2750 }
0x197a   :  { %2642 = vadd.xlane.f32.xlu0 %v2641_v19  ;;  %v2644_v21 = vsel %vm713_vm5, %v4138_v57, 0.0  ;;  %v2765_v46 = vsel %vm713_vm5, %v2763_v44, %v2751_v60  ;;  %v3341_v60 = vld [vmem:[%s4911_s9 + $0x48] ss:$0 sm:$0xff] }
0x197e   :  { %2645 = vadd.xlane.f32.xlu0 %v2644_v21 }
0x1994   :  { %2740 = vrot.lane.b32.xlu0 %v4710_v20, %s4201_s28  ;;  %v2769_v20 = vld [vmem:[%s4909_s7 + $0x118] sm:$0xff] }
0x1995   :  { %v3926_v1 = vpack.c.bf16 %v2769_v20, %v2768_v32  ;;  %v3000_v32 = vld [vmem:[%s4909_s7 + $0x130] sm:$0xff]  ;;  %v3001_v20 = vld [vmem:[%s4909_s7 + $0x138] sm:$0xff] }
0x1996   :  { %v3942_v33 = vpack.c.bf16 %v3001_v20, %v3000_v32 }
0x1997   :  { %3927 = vmatprep.subr.bf16.mxu1 %v3926_v1 }
0x1a07   :  { %v2643_v26 = vpop.xlane.xlu0 %2642 }
0x1a08   :  { %4139 = vrcp.f32 %v2643_v26  ;;  %v3340_v26 = vld [vmem:[%s4909_s7 + $0x173] ss:$0 sm:$0xff] }
0x1a0b   :  { %v2646_v27 = vpop.xlane.xlu0 %2645 }
0x1a0c   :  { %4141 = vrcp.f32 %v2646_v27 }
0x1a0f   :  { %v2741_v42 = vpop.permute.xlu0 %2740 }
0x1a10   :  { %v2762_v43 = vsel %vm158_vm0, %v4706_v18, %v2741_v42  ;;  %v3336_v18 = vld [vmem:[%s4909_s7 + $0x170] ss:$0 sm:$0xff] }
0x1a11   :  { %v2764_v45 = vsel %vm713_vm5, %v2762_v43, %v2749_v41  ;;  %v3007_v41 = vld [vmem:[%s4909_s7 + $0x168] sm:$0xff] }
0x1a12   :  { %v4140_v28 = vpop.eup %4139  ;;  %v3954_v42 = vpack.c.bf16 %v3007_v41, %v3006_v38  ;;  %v3348_v38 = vld [vmem:[%s4909_s7 + $0x175] ss:$0 sm:$0xff] }
0x1a13   :  { %v2649_v29 = vmul.f32 %v4140_v28, %v4136_v40 }
0x1a15   :  { %3719 = vmatprep.mubr.msk.f32.mxu1 %vm713_vm5, %v2649_v29 }
0x1a16   :  { %v4142_v30 = vpop.eup %4141 }
0x1a17   :  { %v2650_v31 = vmul.f32 %v4142_v30, %v4138_v57  ;;  %v3339_v57 = vld [vmem:[%s4909_s7 + $0x172] ss:$0 sm:$0xff] }
0x1a19   :  { %3720 = vmatmul.mubr.msk.f32.vlgmr.msra.gmra.mrb[22].mxu1 %vm713_vm5, %v2650_v31 }
0x1a1a   :  { %3929 = vmatpush3.bf16.msra.mxu1 %v3926_v1  ;;  %v3002_v1 = vld [vmem:[%s4909_s7 + $0x140] sm:$0xff] }
0x1a1b   :  { %3931 = vmatprep.subr.bf16.mxu1 %v3930_v37 }
0x1a1e   :  { %3933 = vmatpush3.bf16.msra.mxu1 %v3930_v37  ;;  %v3004_v37 = vld [vmem:[%s4909_s7 + $0x150] sm:$0xff] }
0x1a1f   :  { %3943 = vmatprep.subr.bf16.mxu1 %v3942_v33 }
0x1aec   :  { %v3721_v6 = vpop.f32.mrb[22].mxu1 }
0x1aed   :  { %2758 = vrot.lane.b32.xlu1 %v3721_v6, %s4203_s19  ;;  %v2729_v22 = vpop.f32.mrb[23].mxu1  ;;  %v3005_v6 = vld [vmem:[%s4909_s7 + $0x158] sm:$0xff] }
0x1aee   :  { %2756 = vrot.lane.b32.xlu0 %v2729_v22, %s4203_s19  ;;  %v3950_v22 = vpack.c.bf16 %v3005_v6, %v3004_v37  ;;  %s4204_s19 = smov [#allocation2]  }
0x1aef   :  { %s3243_s16 = sshll.u32 %s4204_s19, 4  ;;  %s3244_s16 = int_to_ptr.vmem [resolvable:$true] %s3243_s16 }
0x1af0   :  { %s4163_s2 = scalar_lea.vmem %s3244_s16, 32  ;;  %p4168_p1 = scmp.lt.s32.totalorder %s3244_s16, %s3244_s16 }
0x1af1   :  { %p4164_p0 = scmp.ne.s32.totalorder %s3244_s16, %s4163_s2  ;;  %p4169_p2 = scmp.lt.s32.totalorder %s4163_s2, %s4163_s2 }
0x1af3   :  { %p4170_p3 = por %p4169_p2, %p4168_p1 }
0x1af5   :  { %p4171_p4 = pnand %p4170_p3, %p4164_p0 }
0x1b5f   :  { %v2759_v58 = vpop.permute.xlu1 %2758 }
0x1b60   :  { %v2757_v56 = vpop.permute.xlu0 %2756  ;;  %v2767_v47 = vsel %vm1463_vm6, %v2765_v46, %v2759_v58 }
0x1b61   :  { %v2766_v54 = vsel %vm1463_vm6, %v2764_v45, %v2757_v56 }
0x1b62   :  { %3730 = vmatprep.mubr.msk.f32.mxu1 %vm358_vm3, %v2766_v54 }
0x1b63   :  { %3731 = vmatmul.mubr.msk.f32.vlgmr.msra.gmra.mrb[24].mxu1 %vm358_vm3, %v2767_v47 }
0x1b64   :  { %3945 = vmatpush3.bf16.msra.mxu1 %v3942_v33 }
0x1c36   :  { %v3732_v49 = vpop.f32.mrb[24].mxu1 }
0x1c37   :  { %v2855_v53 = vadd.f32 %v3732_v49, %v3336_v18  ;;  %v2849_v48 = vpop.f32.mrb[25].mxu1 }
0x1c38   :  { %v2850_v55 = vadd.f32 %v3336_v18, %v2849_v48 }
0x1c39   :  { %v2859_v59 = vadd.f32 %v2855_v53, %v4633_v52 }
0x1c3a   :  { %v2858_v62 = vadd.f32 %v2850_v55, %v4631_v50  ;;  %v2900_v50 = vld [vmem:[%s4911_s9 + $0x28] sm:$0xff] }
0x1c3b   :  { %v2865_v63 = vsel %vm358_vm3, %v2859_v59, 0.0  ;;  %v3934_v13 = vpack.c.bf16 %v2901_v61, %v2900_v50  ;;  %v3255_v61 = vld [vmem:[%s4909_s7 + $0x91] ss:$0 sm:$0xff] }
0x1c3c   :  { %2866 = vadd.xlane.f32.xlu1 %v2865_v63  ;;  %v2862_v39 = vsel %vm358_vm3, %v2858_v62, 0.0 }
0x1c3d   :  { %2863 = vadd.xlane.f32.xlu0 %v2862_v39  ;;  %3935 = vmatprep.subr.bf16.mxu0 %v3934_v13 }
0x1c3e   :  { %3937 = vmatpush3.bf16.msra.mxu0 %v3934_v13 }
0x1c3f   :  { %3939 = vmatprep.subr.bf16.mxu0 %v3938_v16 }
0x1c42   :  { %3941 = vmatpush3.bf16.msra.mxu0 %v3938_v16 }
0x1c43   :  { %3958 = vmatprep.subr.bf16.mxu0 %v4188_v4 }
0x1cc9   :  { %v2867_v0 = vpop.xlane.xlu1 %2866 }
0x1cca   :  { %v2869_v2 = vmul.f32 0.03125, %v2867_v0  ;;  %v2864_v5 = vpop.xlane.xlu0 %2863 }
0x1ccb   :  { %v2868_v7 = vmul.f32 0.03125, %v2864_v5 }
0x1ccc   :  { %v2871_v8 = vsub.f32 %v2859_v59, %v2869_v2 }
0x1ccd   :  { %v2870_v9 = vsub.f32 %v2858_v62, %v2868_v7  ;;  %v3344_v62 = vld [vmem:[%s4909_s7 + $0x171] ss:$0 sm:$0xff] }
0x1cce   :  { %v2873_v12 = vmul.f32 %v2871_v8, %v2871_v8 }
0x1ccf   :  { %v2872_v10 = vmul.f32 %v2870_v9, %v2870_v9 }
0x1cd0   :  { %v2877_v52 = vsel %vm358_vm3, %v2873_v12, 0.0 }
0x1cd1   :  { %v2874_v11 = vsel %vm358_vm3, %v2872_v10, 0.0 }
0x1cd2   :  { %2875 = vadd.xlane.f32.xlu0 %v2874_v11 }
0x1cd6   :  { %2878 = vadd.xlane.f32.xlu0 %v2877_v52 }
0x1d5f   :  { %v2876_v17 = vpop.xlane.xlu0 %2875 }
0x1d60   :  { %v2880_v51 = vmul.f32 0.03125, %v2876_v17  ;;  %v229_v17 = vadd.f32 %v3255_v61, %v4347_v34 }
0x1d62   :  { %v2882_v23 = vadd.f32 1e-12, %v2880_v51 }
0x1d63   :  { %v2879_v24 = vpop.xlane.xlu0 %2878 }
0x1d64   :  { %4143 = vrsqrt.f32 %v2882_v23  ;;  %v2881_v25 = vmul.f32 0.03125, %v2879_v24  ;;  %v121_v23 = vadd.f32 %v3251_v14, %v4349_v36 }
0x1d66   :  { %v2883_v40 = vadd.f32 1e-12, %v2881_v25  ;;  %v234_v25 = vsel %vm126_vm7, %v229_v17, 0.0 }
0x1d68   :  { %4145 = vrsqrt.f32 %v2883_v40  ;;  %v127_v40 = vsel %vm126_vm7, %v121_v23, 0.0 }
0x1d6e   :  { %v4144_v19 = vpop.eup %4143 }
0x1d6f   :  { %v2886_v21 = vmul.f32 %v4144_v19, %v2870_v9 }
0x1d71   :  { %v2892_v27 = vmul.f32 %v3339_v57, %v2886_v21 }
0x1d72   :  { %v4146_v4 = vpop.eup %4145 }
0x1d73   :  { %v2887_v28 = vmul.f32 %v4146_v4, %v2871_v8  ;;  %v2898_v29 = vadd.f32 %v3340_v26, %v2892_v27 }
0x1d75   :  { %v2893_v30 = vmul.f32 %v3339_v57, %v2887_v28  ;;  %3741 = vmatprep.mubr.msk.f32.mxu0 %vm358_vm3, %v2898_v29 }
0x1d77   :  { %v2899_v31 = vadd.f32 %v3340_v26, %v2893_v30 }
0x1d79   :  { %3742 = vmatmul.mubr.msk.f32.vlgmr.msra.gmra.mrb[26].mxu0 %vm358_vm3, %v2899_v31 }
0x1d7a   :  { %3767 = vmatprep.mubr.msk.f32.mxu0 %vm4189_vm1, %v4187_v3  ;;  %v3946_v3 = vpack.c.bf16 %v3003_v35, %v3002_v1 }
0x1d7c   :  { %3947 = vmatprep.subr.bf16.mxu1 %v3946_v3 }
0x1d7d   :  { %3949 = vmatpush3.bf16.msra.mxu1 %v3946_v3  ;;  %v3347_v3 = vld [vmem:[%s4909_s7 + $0x174] ss:$0 sm:$0xff] }
0x1d7e   :  { %3951 = vmatprep.subr.bf16.mxu1 %v3950_v22 }
0x1d81   :  { %3953 = vmatpush3.bf16.msra.mxu1 %v3950_v22 }
0x1d82   :  { %3955 = vmatprep.subr.bf16.mxu1 %v3954_v42 }
0x1d85   :  { %3957 = vmatpush3.bf16.msra.mxu1 %v3954_v42 }
0x1e4c   :  { %v3743_v43 = vpop.f32.mrb[26].mxu0 }
0x1e4d   :  { %v2987_v58 = vadd.f32 %v3743_v43, %v3341_v60  ;;  %v2981_v44 = vpop.f32.mrb[27].mxu0 }
0x1e4e   :  { %v2982_v45 = vadd.f32 %v3341_v60, %v2981_v44  ;;  %v3136_v44 = vld [vmem:[%s4908_s6] sm:$0x3] }
0x1e4f   :  { %v2993_v56 = vmul.f32 0.70710677, %v2987_v58  ;;  %v2991_v48 = vmul.f32 0.5, %v2987_v58 }
0x1e50   :  { %v2992_v46 = vmul.f32 0.70710677, %v2982_v45  ;;  %v2990_v49 = vmul.f32 0.5, %v2982_v45 }
0x1e51   :  { %4147 = verf.f32 %v2993_v56 }
0x1e52   :  { %4149 = verf.f32 %v2992_v46 }
0x1e5b   :  { %v4148_v54 = vpop.eup %4147 }
0x1e5c   :  { %v4150_v47 = vpop.eup %4149  ;;  %v2997_v18 = vadd.f32 1.0, %v4148_v54 }
0x1e5d   :  { %v2996_v53 = vadd.f32 1.0, %v4150_v47 }
0x1e5e   :  { %v2999_v59 = vmul.f32 %v2997_v18, %v2991_v48 }
0x1e5f   :  { %v2998_v55 = vmul.f32 %v2996_v53, %v2990_v49 }
0x1e61   :  { %3760 = vmatprep.mubr.msk.f32.mxu1 %vm50_vm2, %v2998_v55 }
0x1e62   :  { %3761 = vmatmul.mubr.msk.f32.vlgmr.msra.gmra.mrb[26].mxu1 %vm50_vm2, %v2999_v59  ;;  %v3253_v59 = vld [vmem:[%s4909_s7 + $0x98] ss:$0 sm:$0xff] }
0x1f35   :  { %v3762_v63 = vpop.f32.mrb[26].mxu1 }
0x1f36   :  { %v3091_v39 = vadd.f32 %v3762_v63, %v3344_v62  ;;  %v3085_v0 = vpop.f32.mrb[27].mxu1 }
0x1f37   :  { %v3086_v2 = vadd.f32 %v3344_v62, %v3085_v0  ;;  %v3257_v62 = vld [vmem:[%s4909_s7 + $0x9a] ss:$0 sm:$0xff]  ;;  %v3254_v0 = vld [vmem:[%s4909_s7 + $0x99] ss:$0 sm:$0xff] }
0x1f38   :  { %v3095_v5 = vadd.f32 %v3091_v39, %v2899_v31 }
0x1f39   :  { %v3094_v7 = vadd.f32 %v3086_v2, %v2898_v29  ;;  %v3258_v2 = vld [vmem:[%s4909_s7 + $0x9b] ss:$0 sm:$0xff] }
0x1f3a   :  { %v3101_v8 = vsel %vm358_vm3, %v3095_v5, 0.0 }
0x1f3b   :  { %3102 = vadd.xlane.f32.xlu1 %v3101_v8  ;;  %v3098_v9 = vsel %vm358_vm3, %v3094_v7, 0.0 }
0x1f3c   :  { %3099 = vadd.xlane.f32.xlu0 %v3098_v9  ;;  %v258_v9 = vld [vmem:[%s4906_s4] sm:$0x3] }
0x1fc8   :  { %v3103_v10 = vpop.xlane.xlu1 %3102 }
0x1fc9   :  { %v3105_v11 = vmul.f32 0.03125, %v3103_v10  ;;  %v3100_v12 = vpop.xlane.xlu0 %3099 }
0x1fca   :  { %v3104_v52 = vmul.f32 0.03125, %v3100_v12 }
0x1fcb   :  { %v3107_v50 = vsub.f32 %v3095_v5, %v3105_v11 }
0x1fcc   :  { %v3106_v13 = vsub.f32 %v3094_v7, %v3104_v52 }
0x1fcd   :  { %v3109_v15 = vmul.f32 %v3107_v50, %v3107_v50 }
0x1fce   :  { %v3108_v16 = vmul.f32 %v3106_v13, %v3106_v13 }
0x1fcf   :  { %v3113_v51 = vsel %vm358_vm3, %v3109_v15, 0.0 }
0x1fd0   :  { %3114 = vadd.xlane.f32.xlu1 %v3113_v51  ;;  %v3110_v24 = vsel %vm358_vm3, %v3108_v16, 0.0 }
0x1fd1   :  { %3111 = vadd.xlane.f32.xlu0 %v3110_v24 }
0x1fd4   :  { %235 = vadd.xlane.f32.xlu1 %v234_v25  ;;  %v3350_v25 = vld [vmem:[%s4909_s7 + $0xa0] ss:$0 sm:$0xff] }
0x1fd5   :  { %128 = vadd.xlane.f32.xlu0 %v127_v40 }
0x205d   :  { %v3115_v19 = vpop.xlane.xlu1 %3114 }
0x205e   :  { %v3117_v57 = vmul.f32 0.03125, %v3115_v19  ;;  %v3112_v21 = vpop.xlane.xlu0 %3111  ;;  %v3351_v19 = vld [vmem:[%s4909_s7 + $0xa1] ss:$0 sm:$0xff] }
0x205f   :  { %v3116_v26 = vmul.f32 0.03125, %v3112_v21 }
0x2060   :  { %v3119_v34 = vadd.f32 1e-12, %v3117_v57 }
0x2061   :  { %v3118_v27 = vadd.f32 1e-12, %v3116_v26  ;;  %v236_v4 = vpop.xlane.xlu1 %235 }
0x2062   :  { %4151 = vrsqrt.f32 %v3119_v34  ;;  %v237_v36 = vmul.f32 0.03125, %v236_v4  ;;  %v129_v28 = vpop.xlane.xlu0 %128 }
0x2063   :  { %4153 = vrsqrt.f32 %v3118_v27  ;;  %v131_v29 = vmul.f32 0.03125, %v129_v28 }
0x2064   :  { %v238_v30 = vsub.f32 %v229_v17, %v237_v36 }
0x2065   :  { %v132_v31 = vsub.f32 %v121_v23, %v131_v29 }
0x2066   :  { %v239_v32 = vmul.f32 %v238_v30, %v238_v30 }
0x2067   :  { %v133_v20 = vmul.f32 %v132_v31, %v132_v31 }
0x2068   :  { %v240_v33 = vsel %vm126_vm7, %v239_v32, 0.0 }
0x2069   :  { %241 = vadd.xlane.f32.xlu1 %v240_v33  ;;  %v134_v1 = vsel %vm126_vm7, %v133_v20, 0.0 }
0x206a   :  { %135 = vadd.xlane.f32.xlu0 %v134_v1 }
0x206c   :  { %v4152_v35 = vpop.eup %4151 }
0x206d   :  { %v4154_v37 = vpop.eup %4153  ;;  %v3123_v6 = vmul.f32 %v4152_v35, %v3107_v50 }
0x206e   :  { %v3122_v22 = vmul.f32 %v4154_v37, %v3106_v13 }
0x206f   :  { %v3129_v41 = vmul.f32 %v3347_v3, %v3123_v6 }
0x2070   :  { %v3128_v42 = vmul.f32 %v3347_v3, %v3122_v22 }
0x2071   :  { %v3135_v60 = vadd.f32 %v3348_v38, %v3129_v41 }
0x2072   :  { %v3134_v43 = vadd.f32 %v3348_v38, %v3128_v42 }
0x2074   :  { %v3959_v58 = vpack.c.bf16 %v3135_v60, %v3134_v43 }
0x2076   :  { %3960 = vmatpush3.bf16.msra.mxu0 %v3959_v58 }
0x2079   :  { %3768 = vmatmul.mubr.msk.f32.vlgmr.msra.gmra.mrb[28].mxu0 %vm713_vm5, %v3136_v44 }
0x20f6   :  { %v242_v45 = vpop.xlane.xlu1 %241 }
0x20f7   :  { %v136_v56 = vpop.xlane.xlu0 %135  ;;  %v243_v46 = vmul.f32 0.03125, %v242_v45 }
0x20f8   :  { %v137_v54 = vmul.f32 0.03125, %v136_v56 }
0x20f9   :  { %v244_v47 = vadd.f32 1e-12, %v243_v46 }
0x20fa   :  { %v138_v18 = vadd.f32 1e-12, %v137_v54 }
0x20fb   :  { %4155 = vrsqrt.f32 %v244_v47 }
0x20fc   :  { %4157 = vrsqrt.f32 %v138_v18 }
0x2105   :  { %v4156_v49 = vpop.eup %4155 }
0x2106   :  { %v4158_v53 = vpop.eup %4157  ;;  %v246_v55 = vmul.f32 %v4156_v49, %v238_v30 }
0x2107   :  { %v140_v48 = vmul.f32 %v4158_v53, %v132_v31 }
0x2108   :  { %v251_v39 = vmul.f32 %v3257_v62, %v246_v55 }
0x2109   :  { %v145_v63 = vmul.f32 %v3253_v59, %v140_v48 }
0x210a   :  { %v256_v7 = vadd.f32 %v3258_v2, %v251_v39 }
0x210b   :  { %v150_v5 = vadd.f32 %v3254_v0, %v145_v63 }
0x210d   :  { %v257_v8 = vadd.f32 %v256_v7, %v150_v5 }
0x210f   :  { %v259_v10 = vadd.f32 %v258_v9, %v257_v8 }
0x214c   :  { %v3206_v11 = vpop.f32.mrb[28].mxu0 }
0x214d   :  { %v3210_v12 = vadd.f32 %v3206_v11, %v259_v10  ;;  %v3769_v52 = vpop.f32.mrb[29].mxu0 }
0x214f   :  { %v3213_v50 = vsel %vm126_vm7, %v3210_v12, 0.0 }
0x2150   :  { %3214 = vadd.xlane.f32.xlu0 %v3213_v50 }
0x21dd   :  { %v3215_v61 = vpop.xlane.xlu0 %3214 }
0x21de   :  { %v3216_v13 = vmul.f32 0.03125, %v3215_v61 }
0x21e0   :  { %v3217_v14 = vsub.f32 %v3210_v12, %v3216_v13 }
0x21e2   :  { %v3218_v15 = vmul.f32 %v3217_v14, %v3217_v14 }
0x21e4   :  { %v3219_v16 = vsel %vm126_vm7, %v3218_v15, 0.0 }
0x21e5   :  { %3220 = vadd.xlane.f32.xlu1 %v3219_v16 }
0x2272   :  { %v3221_v17 = vpop.xlane.xlu1 %3220 }
0x2273   :  { %v3222_v51 = vmul.f32 0.03125, %v3221_v17 }
0x2275   :  { %v3223_v23 = vadd.f32 1e-12, %v3222_v51 }
0x2277   :  { %4159 = vrsqrt.f32 %v3223_v23 }
0x2281   :  { %v4160_v24 = vpop.eup %4159 }
0x2282   :  { %v3225_v40 = vmul.f32 %v4160_v24, %v3217_v14 }
0x2284   :  { %v3230_v57 = vmul.f32 %v3350_v25, %v3225_v40 }
0x2286   :  { %v3235_v21 = vadd.f32 %v3351_v19, %v3230_v57 }
0x2288   :  { %3236 = vst.msk [vmem:[#allocation2] sm:$0x3] %vm126_vm7, %v3235_v21 }
0x2289   :  { %4174 = shalt.err (!%p4171_p4)
}
0x228a   :  { %s4175_s3 = scalar_lea.hbm %s4912_s10, 32 }
0x228b   :  { %p4176_p5 = scmp.ne.s32.totalorder %s4912_s10, %s4175_s3  ;;  %p4179_p6 = scmp.lt.u32.totalorder %s4175_s3, %s4912_s10 }
0x228d   :  { %p4181_p7 = pnand %p4179_p6, %p4176_p5 }
0x228f   :  { %4184 = shalt.err (!%p4181_p7)
}
0x2290   :  { %3246 = dma.vmem_to_hbm [thread:$0]  %s3244_s16, 32, %s4912_s10, [#allocation3]  }
0x2291   :  { %4185 = dma.done.wait [#allocation3], 32  }
0x2292   :  { %4186 = vsyncadd [#allocation3], 4294967264 }
0x2293   :  { %3250 = vsyncpa [#allocation3], 1 }

</bundles_post_ra>
